<compile_context>
chip_gen: v7x
topology: tpu7x:2x2x1
jax: 0.10.0
libtpu: 0.0.40
codegen_flags: <defaults>
</compile_context>

<pallas_src>
import jax
import jax.numpy as jnp
from jax import lax
from jax.experimental import pallas as pl
from jax.experimental.pallas import tpu as pltpu


def _round_up(x, m):
    return ((x + m - 1) // m) * m


def _device_kind():
    try:
        return jax.devices()[0].device_kind.lower()
    except Exception:
        return ""


def _pick_packing(in_f, out_f, max_p):
    # Smallest P making both lane widths multiples of 128 (fully lane-dense);
    # else smallest P making the *output* lane-dense; else no packing.
    for p in range(1, max_p + 1):
        if (p * in_f) % 128 == 0 and (p * out_f) % 128 == 0:
            return p
    for p in range(1, max_p + 1):
        if (p * out_f) % 128 == 0:
            return p
    return 1


def _mlp_kernel(x_ref, w1_ref, b1_ref, w2_ref, b2_ref, o_ref):
    # Widen in-kernel (no wrapper-side cast pass over HBM); accumulate in f32.
    x = x_ref[...].astype(jnp.float32)
    h = jnp.dot(x, w1_ref[...], preferred_element_type=jnp.float32,
                precision=lax.Precision.HIGHEST)
    h = jnp.maximum(h + b1_ref[...], 0.0)                     # bias + ReLU (f32 VPU)
    y = jnp.dot(h, w2_ref[...], preferred_element_type=jnp.float32,
                precision=lax.Precision.HIGHEST)
    o_ref[...] = (y + b2_ref[...]).astype(o_ref.dtype)


def make_agent_interaction_encoder(w1, b1, w2, b2):
    """Build the encoder once (packs weights block-diagonally once, not per call).

    w1: (in_f, out_f), b1: (out_f,), w2: (out_f, out_f), b2: (out_f,)
      (weights stored (in, out): kernel computes x @ W + b, equivalent to torch's
       x @ W.T with torch weight of shape (out, in)).
    Returns encode(agent_data) -> float32 (batch, num_agents, out_f).
    """
    f32 = jnp.float32
    w1 = jnp.asarray(w1, f32)
    b1 = jnp.asarray(b1, f32)
    w2 = jnp.asarray(w2, f32)
    b2 = jnp.asarray(b2, f32)
    in_f, out_f = w1.shape

    kind = _device_kind()
    # v5e (and older 128-wide-MXU chips): cap packing at 4 so the kron-inflated
    # matmul work cannot make the kernel MXU-bound.
    max_p = 4 if any(g in kind for g in ("v5", "v4", "v3")) else 8
    P = _pick_packing(in_f, out_f, max_p)
    kin, kout = P * in_f, P * out_f
    kin_pad, kout_pad = _round_up(kin, 128), _round_up(kout, 128)

    # Per-generation VMEM budget (v7x has 64 MiB per TensorCore; v5e/v6e 128 MiB).
    if "v5" in kind or "v6" in kind:
        vmem_budget, vmem_cap = 64 << 20, 120 << 20
    else:  # v7x and unknown chips: conservative
        vmem_budget, vmem_cap = 40 << 20, 56 << 20

    # One-time block-diagonal packing: kron(I_P, W). Off-block weights are exact
    # zeros, so packed results are identical for finite inputs.
    eye_p = jnp.eye(P, dtype=f32)
    w1_bd = jnp.kron(eye_p, w1)                               # (P*in_f, P*out_f)
    w2_bd = jnp.kron(eye_p, w2)                               # (P*out_f, P*out_f)
    b1_p = jnp.tile(b1, P).reshape(1, kout)
    b2_p = jnp.tile(b2, P).reshape(1, kout)

    # Resident-parameter VMEM (with layout padding), x2 for double buffers.
    weight_vmem = 2 * 4 * (_round_up(kin, 8) * kout_pad
                           + _round_up(kout, 8) * kout_pad
                           + 2 * 8 * kout_pad)

    _SPLIT_MIN_PACKED_ROWS = 1024   # only force a 2-way (2-TC) split above this

    def encode(agent_data, *, max_rows_per_tile=None):
        agent_data = jnp.asarray(agent_data)
        if agent_data.ndim == 2:
            agent_data = agent_data[None, ...]                # unsqueeze(0)
        batch, num_agents, feat = agent_data.shape
        assert feat == in_f, f"expected last dim {in_f}, got {feat}"

        M = batch * num_agents
        Mp = _round_up(M, P)                                  # pad only to P multiple
        x2d = agent_data.reshape(M, in_f)
        if Mp != M:                                           # < P extra rows, rare
            x2d = jnp.pad(x2d, ((0, Mp - M), (0, 0)))
        packed_rows = Mp // P
        x_packed = x2d.reshape(packed_rows, kin)              # free row-major reshape

        itemsize = jnp.dtype(x_packed.dtype).itemsize

        # VMEM bytes per packed row: double-buffered in/out tiles + in-kernel
        # f32 intermediates (widened x, h, y), all lane-padded.
        per_row = (2 * (kin_pad * itemsize + kout_pad * 4)
                   + kin_pad * 4 + 2 * kout_pad * 4)
        avail = vmem_budget - weight_vmem - (2 << 20)
        tmp_max = max((avail // per_row) // 8 * 8, 8)         # packed rows per tile
        if max_rows_per_tile is not None:
            tmp_max = max(int(max_rows_per_tile) // P, 1)

        if packed_rows <= tmp_max and packed_rows <= _SPLIT_MIN_PACKED_ROWS:
            tmp = packed_rows                                 # single tile == full dims
        else:
            n_tiles = max(2, pl.cdiv(packed_rows, tmp_max))   # >=2 tiles for 2 TCs
            if n_tiles % 2:
                n_tiles += 1                                  # even -> balanced split
            tmp = _round_up(pl.cdiv(packed_rows, n_tiles), 8)
        grid = (pl.cdiv(packed_rows, tmp),)                   # ragged last block masked

        tmp_pad = _round_up(tmp, 8)
        need = (2 * (tmp_pad * kin_pad * itemsize + tmp_pad * kout_pad * 4)
                + tmp_pad * kin_pad * 4 + 2 * tmp_pad * kout_pad * 4
                + weight_vmem)
        vmem_limit = int(min(max(need + (4 << 20), 16 << 20), vmem_cap))

        cost = pl.CostEstimate(
            flops=int(2 * packed_rows * (kin * kout + kout * kout)),
            transcendentals=0,
            bytes_accessed=int(M * in_f * itemsize + M * out_f * 4
                               + (kin * kout + kout * kout + 2 * kout) * 4),
        )

        out_packed = pl.pallas_call(
            _mlp_kernel,
            out_shape=jax.ShapeDtypeStruct((packed_rows, kout), jnp.float32),
            grid_spec=pltpu.PrefetchScalarGridSpec(
                num_scalar_prefetch=0,
                grid=grid,
                in_specs=[
                    pl.BlockSpec((tmp, kin), lambda i: (i, 0)),    # x row tile
                    pl.BlockSpec((kin, kout), lambda i: (0, 0)),   # W1 (VMEM-resident)
                    pl.BlockSpec((1, kout), lambda i: (0, 0)),     # b1
                    pl.BlockSpec((kout, kout), lambda i: (0, 0)),  # W2 (VMEM-resident)
                    pl.BlockSpec((1, kout), lambda i: (0, 0)),     # b2
                ],
                out_specs=pl.BlockSpec((tmp, kout), lambda i: (i, 0)),
            ),
            compiler_params=pltpu.CompilerParams(
                dimension_semantics=("parallel",),
                vmem_limit_bytes=vmem_limit,
            ),
            cost_estimate=cost,
        )(x_packed, w1_bd, b1_p, w2_bd, b2_p)

        out2d = out_packed.reshape(Mp, out_f)
        if Mp != M:
            out2d = out2d[:M]                                  # drop P-padding rows
        return out2d.reshape(batch, num_agents, out_f)

    return encode


def agent_interaction_encoder(agent_data, w1, b1, w2, b2, **kwargs):
    """One-shot convenience wrapper (re-packs weights each call; prefer the factory)."""
    return make_agent_interaction_encoder(w1, b1, w2, b2)(agent_data, **kwargs)


def _reference(agent_data, w1, b1, w2, b2):
    x = jnp.asarray(agent_data, jnp.float32)
    if x.ndim == 2:
        x = x[None, ...]
    h = jnp.maximum(x @ w1.astype(jnp.float32) + b1.astype(jnp.float32), 0.0)
    return h @ w2.astype(jnp.float32) + b2.astype(jnp.float32)


if __name__ == "__main__":
    batch, num_agents, in_features, out_features = 2, 8, 16, 32

    key = jax.random.PRNGKey(0)
    k_x, k_w1, k_b1, k_w2, k_b2, k_x2 = jax.random.split(key, 6)

    agent_data = jax.random.normal(
        k_x, (batch, num_agents, in_features), dtype=jnp.float32)

    lim1 = 1.0 / (in_features ** 0.5)
    lim2 = 1.0 / (out_features ** 0.5)
    w1 = jax.random.uniform(k_w1, (in_features, out_features),
                            minval=-lim1, maxval=lim1, dtype=jnp.float32)
    b1 = jax.random.uniform(k_b1, (out_features,),
                            minval=-lim1, maxval=lim1, dtype=jnp.float32)
    w2 = jax.random.uniform(k_w2, (out_features, out_features),
                            minval=-lim2, maxval=lim2, dtype=jnp.float32)
    b2 = jax.random.uniform(k_b2, (out_features,),
                            minval=-lim2, maxval=lim2, dtype=jnp.float32)

    encoder = make_agent_interaction_encoder(w1, b1, w2, b2)

    # Check 1: small shapes, single tile.
    out = jax.block_until_ready(encoder(agent_data))
    ref = _reference(agent_data, w1, b1, w2, b2)
    assert out.shape == (batch, num_agents, out_features)
    assert jnp.allclose(out, ref, atol=1e-4, rtol=1e-4)

    # Check 2: multi-tile grid + ragged last block + P-padding path (M=150).
    x_big = jax.random.normal(k_x2, (3, 50, in_features), dtype=jnp.float32)
    out_big = jax.block_until_ready(encoder(x_big, max_rows_per_tile=64))
    ref_big = _reference(x_big, w1, b1, w2, b2)
    assert out_big.shape == (3, 50, out_features)
    assert jnp.allclose(out_big, ref_big, atol=1e-4, rtol=1e-4)

    print("KERNEL_OK")
</pallas_src>

<mosaic_0001>
module attributes {stable_mosaic.version = 11 : i64} {
  func.func @_mlp_kernel(%arg0: i32, %arg1: memref<2x128xf32, #tpu.memory_space<vmem>>, %arg2: memref<128x256xf32, #tpu.memory_space<vmem>>, %arg3: memref<1x256xf32, #tpu.memory_space<vmem>>, %arg4: memref<256x256xf32, #tpu.memory_space<vmem>>, %arg5: memref<1x256xf32, #tpu.memory_space<vmem>>, %arg6: memref<2x256xf32, #tpu.memory_space<vmem>>) attributes {dimension_semantics = [#tpu.dimension_semantics<parallel>], iteration_bounds = array<i64: 1>, scalar_prefetch = 0 : i64, scratch_operands = 0 : i64, tpu.core_type = #tpu.core_type<tc>, window_params = [{transform_indices = @transform_0, window_bounds = array<i64: 2, 128>}, {pipeline_mode = #tpu.pipeline_mode<synchronous>, transform_indices = @transform_1, window_bounds = array<i64: 128, 256>}, {pipeline_mode = #tpu.pipeline_mode<synchronous>, transform_indices = @transform_2, window_bounds = array<i64: 1, 256>}, {pipeline_mode = #tpu.pipeline_mode<synchronous>, transform_indices = @transform_3, window_bounds = array<i64: 256, 256>}, {pipeline_mode = #tpu.pipeline_mode<synchronous>, transform_indices = @transform_4, window_bounds = array<i64: 1, 256>}, {transform_indices = @transform_5, window_bounds = array<i64: 2, 256>}]} {
    %c0 = arith.constant 0 : index
    %c0_0 = arith.constant 0 : index
    %0 = vector.load %arg1[%c0, %c0_0] : memref<2x128xf32, #tpu.memory_space<vmem>>, vector<2x128xf32>
    %c0_1 = arith.constant 0 : index
    %c0_2 = arith.constant 0 : index
    %1 = vector.load %arg2[%c0_1, %c0_2] : memref<128x256xf32, #tpu.memory_space<vmem>>, vector<128x256xf32>
    %cst = arith.constant dense<0.000000e+00> : vector<2x256xf32>
    %2 = tpu.matmul %0, %1, %cst {dimension_numbers = #tpu.dot_dimension_numbers<[1], [0], [0], [1], [0, 0, 1, 1], [], []>, precision = #tpu.contract_precision<fp32>} : vector<2x128xf32>, vector<128x256xf32>, vector<2x256xf32> -> vector<2x256xf32>
    %c0_3 = arith.constant 0 : index
    %c0_4 = arith.constant 0 : index
    %3 = vector.load %arg3[%c0_3, %c0_4] : memref<1x256xf32, #tpu.memory_space<vmem>>, vector<1x256xf32>
    %4 = vector.broadcast %3 : vector<1x256xf32> to vector<2x256xf32>
    %5 = arith.addf %2, %4 : vector<2x256xf32>
    %cst_5 = arith.constant 0.000000e+00 : f32
    %6 = vector.broadcast %cst_5 : f32 to vector<2x256xf32>
    %7 = arith.maximumf %5, %6 : vector<2x256xf32>
    %c0_6 = arith.constant 0 : index
    %c0_7 = arith.constant 0 : index
    %8 = vector.load %arg4[%c0_6, %c0_7] : memref<256x256xf32, #tpu.memory_space<vmem>>, vector<256x256xf32>
    %cst_8 = arith.constant dense<0.000000e+00> : vector<2x256xf32>
    %9 = tpu.matmul %7, %8, %cst_8 {dimension_numbers = #tpu.dot_dimension_numbers<[1], [0], [0], [1], [0, 0, 1, 1], [], []>, precision = #tpu.contract_precision<fp32>} : vector<2x256xf32>, vector<256x256xf32>, vector<2x256xf32> -> vector<2x256xf32>
    %c0_9 = arith.constant 0 : index
    %c0_10 = arith.constant 0 : index
    %10 = vector.load %arg5[%c0_9, %c0_10] : memref<1x256xf32, #tpu.memory_space<vmem>>, vector<1x256xf32>
    %11 = vector.broadcast %10 : vector<1x256xf32> to vector<2x256xf32>
    %12 = arith.addf %9, %11 : vector<2x256xf32>
    %c0_11 = arith.constant 0 : index
    %c0_12 = arith.constant 0 : index
    %13 = vector.load %arg6[%c0_11, %c0_12] : memref<2x256xf32, #tpu.memory_space<vmem>>, vector<2x256xf32>
    tpu.vector_store %arg6[%c0_11, %c0_12], %12 {strides = array<i32>} : memref<2x256xf32, #tpu.memory_space<vmem>>, vector<2x256xf32>,
    return
  }
  func.func @transform_0(%arg0: i32) -> (i32, i32) {
    %c0_i32 = arith.constant 0 : i32
    %c0_i32_0 = arith.constant 0 : i32
    return %arg0, %c0_i32 : i32, i32
  }
  func.func @transform_1(%arg0: i32) -> (i32, i32) {
    %c0_i32 = arith.constant 0 : i32
    %c0_i32_0 = arith.constant 0 : i32
    %c0_i32_1 = arith.constant 0 : i32
    return %c0_i32, %c0_i32_0 : i32, i32
  }
  func.func @transform_2(%arg0: i32) -> (i32, i32) {
    %c0_i32 = arith.constant 0 : i32
    %c0_i32_0 = arith.constant 0 : i32
    %c0_i32_1 = arith.constant 0 : i32
    return %c0_i32, %c0_i32_0 : i32, i32
  }
  func.func @transform_3(%arg0: i32) -> (i32, i32) {
    %c0_i32 = arith.constant 0 : i32
    %c0_i32_0 = arith.constant 0 : i32
    %c0_i32_1 = arith.constant 0 : i32
    return %c0_i32, %c0_i32_0 : i32, i32
  }
  func.func @transform_4(%arg0: i32) -> (i32, i32) {
    %c0_i32 = arith.constant 0 : i32
    %c0_i32_0 = arith.constant 0 : i32
    %c0_i32_1 = arith.constant 0 : i32
    return %c0_i32, %c0_i32_0 : i32, i32
  }
  func.func @transform_5(%arg0: i32) -> (i32, i32) {
    %c0_i32 = arith.constant 0 : i32
    %c0_i32_0 = arith.constant 0 : i32
    return %arg0, %c0_i32 : i32, i32
  }
}

</mosaic_0001>

<bundles_post_ra>
// kernel: tpu_custom_call.1
= control target key start
LH: loop header
LB: loop body
LE: loop exit
PB: predicated region body
PF: predicated region fallthrough
CT: control target
= control target key end

     0   :  { %10 = vsyncpa [#allocation3], 0  ;;  %s4831_s0 = inlined_call_operand.hbm [shape: f32[2,128], index: 0, kind: input, shape index: {}]   ;;  %s4832_s1 = inlined_call_operand.hbm [shape: f32[128,256], index: 1, kind: input, shape index: {}]   ;;  %s4833_s2 = inlined_call_operand.vmem [shape: f32[1,256], index: 2, kind: input, shape index: {}]   ;;  %s4834_s3 = inlined_call_operand.hbm [shape: f32[256,256], index: 3, kind: input, shape index: {}]   ;;  %s4835_s4 = inlined_call_operand.vmem [shape: f32[1,256], index: 4, kind: input, shape index: {}]   ;;  %s4836_s5 = inlined_call_operand.hbm [shape: f32[2,256], index: 5, kind: output, shape index: {}]  }
   0x1   :  { %11 = vsyncpa [#allocation6], 0 }
   0x2   :  { %12 = vsyncpa [#allocation4], 0  ;;  %s3052_s18 = smov [#allocation5]   ;;  %s2958_s22 = scalar_lea.hbm %s4832_s1, 4096 }
   0x3   :  { %s28_s19 = sshll.u32 %s3052_s18, 4  ;;  %p2959_p0 = scmp.ne.s32.totalorder %s4832_s1, %s2958_s22  ;;  %s29_s19 = int_to_ptr.vmem [resolvable:$true] %s28_s19 }
   0x4   :  { %p2962_p1 = scmp.lt.u32.totalorder %s2958_s22, %s4832_s1 }
   0x6   :  { %p2964_p2 = pnand %p2962_p1, %p2959_p0 }
   0x8   :  { %2967 = shalt.err (!%p2964_p2)
}
   0x9   :  { %s2968_s27 = scalar_lea.vmem %s29_s19, 4096  ;;  %p2973_p4 = scmp.lt.s32.totalorder %s29_s19, %s29_s19 }
   0xa   :  { %p2969_p3 = scmp.ne.s32.totalorder %s29_s19, %s2968_s27  ;;  %p2974_p5 = scmp.lt.s32.totalorder %s2968_s27, %s2968_s27 }
   0xc   :  { %p2975_p6 = por %p2974_p5, %p2973_p4 }
   0xe   :  { %p2976_p7 = pnand %p2975_p6, %p2969_p3 }
  0x10   :  { %2979 = shalt.err (!%p2976_p7)
}
  0x11   :  { %s3053_s28 = smov 256   ;;  %s3054_s29 = smov 16  }
  0x12   :  { %34 = dma.hbm_to_vmem [thread:$0]  %s4832_s1, 4096, %s29_s19, [#allocation6], %s3053_s28, %s3053_s28, %s3054_s29  }
  0x13   :  { %s3055_s7 = smov [#allocation2]   ;;  %s3056_s9 = smov [#allocation7]  }
  0x14   :  { %s19_s8 = sshll.u32 %s3055_s7, 4  ;;  %s42_s10 = sshll.u32 %s3056_s9, 4  ;;  %s20_s8 = int_to_ptr.vmem [resolvable:$true] %s19_s8  ;;  %s43_s10 = int_to_ptr.vmem [resolvable:$true] %s42_s10 }
  0x15   :  { %s2980_s13 = scalar_lea.hbm %s4831_s0, 32 }
  0x16   :  { %p2981_p8 = scmp.ne.s32.totalorder %s4831_s0, %s2980_s13  ;;  %p2984_p9 = scmp.lt.u32.totalorder %s2980_s13, %s4831_s0 }
  0x18   :  { %p2986_p10 = pnand %p2984_p9, %p2981_p8 }
  0x1a   :  { %2989 = shalt.err (!%p2986_p10)
}
  0x1b   :  { %s2990_s1 = scalar_lea.vmem %s20_s8, 32  ;;  %p2995_p12 = scmp.lt.s32.totalorder %s20_s8, %s20_s8 }
  0x1c   :  { %p2991_p11 = scmp.ne.s32.totalorder %s20_s8, %s2990_s1  ;;  %p2996_p13 = scmp.lt.s32.totalorder %s2990_s1, %s2990_s1 }
  0x1e   :  { %p2997_p0 = por %p2996_p13, %p2995_p12 }
  0x20   :  { %p2998_p1 = pnand %p2997_p0, %p2991_p11 }
  0x22   :  { %3001 = shalt.err (!%p2998_p1)
}
  0x23   :  { %22 = dma.hbm_to_vmem [thread:$0]  %s4831_s0, 32, %s20_s8, [#allocation3]  }
  0x24   :  { %s3002_s22 = scalar_lea.hbm %s4834_s3, 8192 }
  0x25   :  { %p3003_p2 = scmp.ne.s32.totalorder %s4834_s3, %s3002_s22  ;;  %p3006_p3 = scmp.lt.u32.totalorder %s3002_s22, %s4834_s3 }
  0x27   :  { %p3008_p4 = pnand %p3006_p3, %p3003_p2 }
  0x29   :  { %3011 = shalt.err (!%p3008_p4)
}
  0x2a   :  { %s3012_s27 = scalar_lea.vmem %s43_s10, 8192  ;;  %p3017_p6 = scmp.lt.s32.totalorder %s43_s10, %s43_s10 }
  0x2b   :  { %p3013_p5 = scmp.ne.s32.totalorder %s43_s10, %s3012_s27  ;;  %p3018_p7 = scmp.lt.s32.totalorder %s3012_s27, %s3012_s27 }
  0x2d   :  { %p3019_p8 = por %p3018_p7, %p3017_p6 }
  0x2f   :  { %p3020_p9 = pnand %p3019_p8, %p3013_p5 }
  0x31   :  { %3023 = shalt.err (!%p3020_p9)
}
  0x32   :  { %48 = dma.hbm_to_vmem [thread:$0]  %s4834_s3, 8192, %s43_s10, [#allocation6], %s3053_s28, %s3053_s28, %s3054_s29  }
  0x33   :  { %3046 = dma.done.wait [#allocation3], 32  }
  0x34   :  { %3047 = vsyncadd [#allocation3], 4294967264 }
  0x35   :  { %3048 = dma.done.wait [#allocation6], 12288  }
  0x36   :  { %3049 = vsyncadd [#allocation6], 4294955008  ;;  %v4839_v0 = vmov 0.0   ;;  %v62_v1 = vld [vmem:[#allocation5 + $0x8] sm:$0xff]  ;;  %v64_v2 = vld [vmem:[#allocation5 + $0x18] sm:$0xff]  ;;  %s3058_s6 = smov [#allocation8]  }
  0x37   :  { %201 = vmatprep.mubr.f32.mxu0 %v4839_v0  ;;  %v61_v3 = vld [vmem:[#allocation5] sm:$0xff]  ;;  %v105_v4 = vand.u32 4294901760, %v62_v1  ;;  %v109_v5 = vand.u32 4294901760, %v64_v2  ;;  %v63_v6 = vld [vmem:[#allocation5 + $0x10] sm:$0xff]  ;;  %v66_v8 = vld [vmem:[#allocation5 + $0x28] sm:$0xff]  ;;  %s2340_s7 = sshll.u32 %s3058_s6, 4  ;;  %s2341_s7 = int_to_ptr.vmem [resolvable:$true] %s2340_s7 }
  0x38   :  { %v107_v7 = vand.u32 4294901760, %v61_v3  ;;  %v68_v9 = vld [vmem:[#allocation5 + $0x38] sm:$0xff]  ;;  %v111_v10 = vand.u32 4294901760, %v63_v6  ;;  %v113_v11 = vand.u32 4294901760, %v66_v8  ;;  %v65_v13 = vld [vmem:[#allocation5 + $0x20] sm:$0xff]  ;;  %v67_v14 = vld [vmem:[#allocation5 + $0x30] sm:$0xff]  ;;  %p3029_p11 = scmp.lt.s32.totalorder %s2341_s7, %s2341_s7 }
  0x39   :  { %v117_v12 = vand.u32 4294901760, %v68_v9  ;;  %v70_v15 = vld [vmem:[#allocation5 + $0x48] sm:$0xff]  ;;  %v3132_v16 = vpack.c.bf16 %v109_v5, %v105_v4  ;;  %v72_v17 = vld [vmem:[#allocation5 + $0x58] sm:$0xff]  ;;  %v69_v18 = vld [vmem:[#allocation5 + $0x40] sm:$0xff]  ;;  %v115_v23 = vand.u32 4294901760, %v65_v13  ;;  %v119_v24 = vand.u32 4294901760, %v67_v14 }
  0x3a   :  { %v71_v19 = vld [vmem:[#allocation5 + $0x50] sm:$0xff]  ;;  %v3134_v20 = vpack.c.bf16 %v111_v10, %v107_v7  ;;  %v74_v22 = vld [vmem:[#allocation5 + $0x68] sm:$0xff]  ;;  %v121_v25 = vand.u32 4294901760, %v70_v15  ;;  %v125_v26 = vand.u32 4294901760, %v72_v17  ;;  %v123_v27 = vand.u32 4294901760, %v69_v18  ;;  %v76_v29 = vld [vmem:[#allocation5 + $0x78] sm:$0xff] }
  0x3b   :  { %5131 = vst [vmem:[#allocation12_spill] sm:$0xff] %v3132_v16  ;;  %v3136_v21 = vpack.c.bf16 %v117_v12, %v113_v11  ;;  %2352 = vmatprep.subr.bf16.mxu0 %v3132_v16  ;;  %v127_v28 = vand.u32 4294901760, %v71_v19  ;;  %v73_v30 = vld [vmem:[#allocation5 + $0x60] sm:$0xff]  ;;  %v3141_v31 = vpack.c.bf16 %v119_v24, %v115_v23  ;;  %v129_v32 = vand.u32 4294901760, %v74_v22  ;;  %v75_v33 = vld [vmem:[#allocation5 + $0x70] sm:$0xff]  ;;  %v78_v34 = vld [vmem:[#allocation5 + $0x88] sm:$0xff] }
  0x3c   :  { %5132 = vst [vmem:[#allocation13_spill] sm:$0xff] %v3134_v20  ;;  %2354 = vmatpush1.bf16.msra.mxu0 %v3134_v20  ;;  %v80_v35 = vld [vmem:[#allocation5 + $0x98] sm:$0xff]  ;;  %v3143_v36 = vsub.f32 %v62_v1, %v105_v4  ;;  %v3145_v37 = vsub.f32 %v64_v2, %v109_v5  ;;  %v3147_v38 = vsub.f32 %v61_v3, %v107_v7  ;;  %v133_v43 = vand.u32 4294901760, %v76_v29  ;;  %v77_v48 = vld [vmem:[#allocation5 + $0x80] sm:$0xff]  ;;  %v79_v49 = vld [vmem:[#allocation5 + $0x90] sm:$0xff]  ;;  %s3024_s8 = scalar_lea.vmem %s2341_s7, 64 }
  0x3d   :  { %5133 = vst [vmem:[#allocation14_spill] sm:$0xff] %v3136_v21  ;;  %2356 = vmatprep.subr.bf16.mxu0 %v3136_v21  ;;  %5134 = vst [vmem:[#allocation15_spill] sm:$0xff] %v3141_v31  ;;  %v3149_v39 = vpack.c.bf16 %v125_v26, %v121_v25  ;;  %v3151_v40 = vsub.f32 %v63_v6, %v111_v10  ;;  %v3153_v41 = vsub.f32 %v66_v8, %v113_v11  ;;  %v82_v54 = vld [vmem:[#allocation5 + $0xa8] sm:$0xff]  ;;  %v84_v55 = vld [vmem:[#allocation5 + $0xb8] sm:$0xff]  ;;  %p3025_p10 = scmp.ne.s32.totalorder %s2341_s7, %s3024_s8  ;;  %p3030_p12 = scmp.lt.s32.totalorder %s3024_s8, %s3024_s8 }
  0x3e   :  { %v3155_v42 = vpack.c.bf16 %v127_v28, %v123_v27  ;;  %v131_v44 = vand.u32 4294901760, %v73_v30  ;;  %v135_v45 = vand.u32 4294901760, %v75_v33  ;;  %v137_v46 = vand.u32 4294901760, %v78_v34  ;;  %v81_v56 = vld [vmem:[#allocation5 + $0xa0] sm:$0xff]  ;;  %v83_v61 = vld [vmem:[#allocation5 + $0xb0] sm:$0xff]  ;;  %v86_v62 = vld [vmem:[#allocation5 + $0xc8] sm:$0xff] }
  0x3f   :  { %5135 = vst [vmem:[#allocation16_spill] sm:$0xff] %v3149_v39  ;;  %v141_v47 = vand.u32 4294901760, %v80_v35  ;;  %v3158_v50 = vsub.f32 %v68_v9, %v117_v12  ;;  %v3160_v51 = vsub.f32 %v65_v13, %v115_v23  ;;  %v3162_v52 = vsub.f32 %v67_v14, %v119_v24  ;;  %v88_v63 = vld [vmem:[#allocation5 + $0xd8] sm:$0xff]  ;;  %v85_v9 = vld [vmem:[#allocation5 + $0xc0] sm:$0xff]  ;;  %v87_v10 = vld [vmem:[#allocation5 + $0xd0] sm:$0xff]  ;;  %p3031_p13 = por %p3030_p12, %p3029_p11 }
  0x40   :  { %5136 = vst [vmem:[#allocation17_spill] sm:$0xff] %v3155_v42  ;;  %2358 = vmatpush1.bf16.msra.mxu0 %v3141_v31  ;;  %v3165_v53 = vpack.c.bf16 %v133_v43, %v129_v32  ;;  %v3167_v57 = vsub.f32 %v70_v15, %v121_v25  ;;  %v3169_v58 = vsub.f32 %v72_v17, %v125_v26  ;;  %v139_v3 = vand.u32 4294901760, %v77_v48  ;;  %v60_v26 = vld [vmem:[#allocation2] sm:$0x3] }
  0x41   :  { %2360 = vmatprep.subr.bf16.mxu0 %v3149_v39  ;;  %v3171_v59 = vsub.f32 %v69_v18, %v123_v27  ;;  %v3173_v60 = vsub.f32 %v71_v19, %v127_v28  ;;  %v3175_v1 = vsub.f32 %v74_v22, %v129_v32  ;;  %v3177_v2 = vsub.f32 %v76_v29, %v133_v43  ;;  %v90_v43 = vld [vmem:[#allocation5 + $0xe8] sm:$0xff]  ;;  %p3032_p0 = pnand %p3031_p13, %p3025_p10 }
  0x42   :  { %5137 = vst [vmem:[#allocation18_spill] sm:$0xff] %v3165_v53  ;;  %v143_v4 = vand.u32 4294901760, %v79_v49  ;;  %v3180_v5 = vpack.c.bf16 %v135_v45, %v131_v44  ;;  %v3182_v6 = vpack.c.bf16 %v141_v47, %v137_v46  ;;  %v145_v7 = vand.u32 4294901760, %v82_v54 }
  0x43   :  { %v149_v8 = vand.u32 4294901760, %v84_v55  ;;  %v147_v11 = vand.u32 4294901760, %v81_v56  ;;  %v151_v12 = vand.u32 4294901760, %v83_v61  ;;  %v153_v13 = vand.u32 4294901760, %v86_v62 }
  0x44   :  { %2362 = vmatpush1.bf16.msra.mxu0 %v3155_v42  ;;  %5138 = vst [vmem:[#allocation19_spill] sm:$0xff] %v3180_v5  ;;  %5139 = vst [vmem:[#allocation20_spill] sm:$0xff] %v3182_v6  ;;  %v157_v14 = vand.u32 4294901760, %v88_v63  ;;  %v3185_v15 = vsub.f32 %v73_v30, %v131_v44  ;;  %v3187_v17 = vsub.f32 %v75_v33, %v135_v45  ;;  %v155_v24 = vand.u32 4294901760, %v85_v9  ;;  %v92_v45 = vld [vmem:[#allocation5 + $0xf8] sm:$0xff] }
  0x45   :  { %2364 = vmatprep.subr.bf16.mxu0 %v3165_v53  ;;  %v3189_v18 = vsub.f32 %v78_v34, %v137_v46  ;;  %v3191_v19 = vsub.f32 %v80_v35, %v141_v47  ;;  %v3193_v22 = vpack.c.bf16 %v143_v4, %v139_v3  ;;  %v3195_v23 = vsub.f32 %v77_v48, %v139_v3 }
  0x46   :  { %v159_v25 = vand.u32 4294901760, %v87_v10  ;;  %v3198_v27 = vsub.f32 %v79_v49, %v143_v4  ;;  %v3200_v28 = vpack.c.bf16 %v149_v8, %v145_v7  ;;  %v3202_v29 = vsub.f32 %v82_v54, %v145_v7 }
  0x47   :  { %5140 = vst [vmem:[#allocation21_spill] sm:$0xff] %v3193_v22  ;;  %v3204_v30 = vsub.f32 %v84_v55, %v149_v8  ;;  %v3207_v32 = vpack.c.bf16 %v151_v12, %v147_v11  ;;  %v3209_v33 = vsub.f32 %v81_v56, %v147_v11  ;;  %v3211_v34 = vsub.f32 %v83_v61, %v151_v12  ;;  %v89_v56 = vld [vmem:[#allocation5 + $0xe0] sm:$0xff]  ;;  %v3227_v61 = vld [vmem:[#allocation5 + $0xf0] sm:$0xff] }
  0x48   :  { %2366 = vmatpush1.bf16.msra.mxu0 %v3180_v5  ;;  %5141 = vst [vmem:[#allocation22_spill] sm:$0xff] %v3200_v28  ;;  %v3213_v35 = vpack.c.bf16 %v157_v14, %v153_v13  ;;  %v3215_v44 = vsub.f32 %v86_v62, %v153_v13  ;;  %v4837_v46 = vand.u32 4294901760, %v3143_v36  ;;  %v4838_v47 = vand.u32 4294901760, %v3145_v37 }
  0x49   :  { %2368 = vmatprep.subr.bf16.mxu0 %v3182_v6  ;;  %5142 = vst [vmem:[#allocation23_spill] sm:$0xff] %v3207_v32  ;;  %v3219_v48 = vand.u32 4294901760, %v60_v26  ;;  %v3221_v49 = vsub.f32 %v88_v63, %v157_v14  ;;  %v3223_v54 = vpack.c.bf16 %v159_v25, %v155_v24  ;;  %v3225_v55 = vsub.f32 %v85_v9, %v155_v24 }
  0x4a   :  { %5143 = vst [vmem:[#allocation24_spill] sm:$0xff] %v3213_v35  ;;  %v4841_v3 = vand.u32 4294901760, %v3147_v38  ;;  %v3231_v62 = vsub.f32 %v87_v10, %v159_v25  ;;  %v161_v4 = vand.u32 4294901760, %v90_v43  ;;  %v216_v7 = vsub.f32 %v3143_v36, %v4837_v46 }
  0x4b   :  { %5144 = vst [vmem:[#allocation25_spill] sm:$0xff] %v3219_v48  ;;  %5145 = vst [vmem:[#allocation26_spill] sm:$0xff] %v3221_v49  ;;  %v228_v63 = vsub.f32 %v3145_v37, %v4838_v47  ;;  %v165_v8 = vand.u32 4294901760, %v92_v45  ;;  %v3241_v9 = vsub.f32 %v60_v26, %v3219_v48  ;;  %v4842_v11 = vand.u32 4294901760, %v3151_v40 }
  0x4c   :  { %5146 = vst [vmem:[#allocation27_spill] sm:$0xff] %v3223_v54  ;;  %5147 = vst [vmem:[#allocation28_spill] sm:$0xff] %v3225_v55  ;;  %2370 = vmatpush1.bf16.msra.mxu0 %v3193_v22  ;;  %v4847_v10 = vand.u32 4294901760, %v3153_v41  ;;  %v163_v12 = vand.u32 4294901760, %v89_v56  ;;  %v4848_v14 = vand.u32 4294901760, %v3158_v50  ;;  %v217_v25 = vand.u32 4294901760, %v216_v7 }
  0x4d   :  { %5148 = vst [vmem:[#allocation29_spill] sm:$0xff] %v3231_v62  ;;  %2372 = vmatprep.subr.bf16.mxu0 %v3200_v28  ;;  %5149 = vst [vmem:[#allocation30_spill] sm:$0xff] %v3241_v9  ;;  %v229_v46 = vand.u32 4294901760, %v228_v63  ;;  %v222_v26 = vsub.f32 %v3147_v38, %v4841_v3  ;;  %v234_v0 = vsub.f32 %v3151_v40, %v4842_v11  ;;  %v4857_v63 = vand.u32 4294901760, %v3162_v52 }
  0x4e   :  { %v240_v13 = vsub.f32 %v3153_v41, %v4847_v10  ;;  %v252_v7 = vsub.f32 %v3158_v50, %v4848_v14  ;;  %v3264_v47 = vpack.c.bf16 %v165_v8, %v161_v4  ;;  %v3266_v3 = vsub.f32 %v90_v43, %v161_v4 }
  0x4f   :  { %v3268_v24 = vsub.f32 %v92_v45, %v165_v8  ;;  %v5153_v10 = vand.u32 4294901760, %v3160_v51  ;;  %v4862_v22 = vand.u32 4294901760, %v3169_v58  ;;  %v2383_v43 = vpack.c.bf16 %v229_v46, %v217_v25 }
  0x50   :  { %2374 = vmatpush1.bf16.msra.mxu0 %v3207_v32  ;;  %5150 = vst [vmem:[#allocation31_spill] sm:$0xff] %v3264_v47  ;;  %v5151_v32 = vand.u32 4294901760, %v3227_v61  ;;  %v5154_v45 = vand.u32 4294901760, %v3241_v9  ;;  %v223_v8 = vand.u32 4294901760, %v222_v26  ;;  %v241_v6 = vand.u32 4294901760, %v240_v13 }
  0x51   :  { %2376 = vmatprep.subr.bf16.mxu0 %v3213_v35  ;;  %v246_v14 = vsub.f32 %v3160_v51, %v5153_v10  ;;  %v258_v35 = vsub.f32 %v3162_v52, %v4857_v63  ;;  %v253_v5 = vand.u32 4294901760, %v252_v7  ;;  %v4865_v10 = vand.u32 4294901760, %v3173_v60 }
  0x52   :  { %v3273_v28 = vpack.c.bf16 %v5151_v32, %v163_v12  ;;  %v205_v4 = vsub.f32 %v3241_v9, %v5154_v45  ;;  %v235_v32 = vand.u32 4294901760, %v234_v0  ;;  %v5155_v63 = vand.u32 4294901760, %v3167_v57 }
  0x53   :  { %v276_v25 = vsub.f32 %v3169_v58, %v4862_v22  ;;  %v4870_v26 = vand.u32 4294901760, %v3175_v1  ;;  %v4875_v45 = vand.u32 4294901760, %v3177_v2  ;;  %v247_v11 = vand.u32 4294901760, %v246_v14 }
  0x54   :  { %5152 = vst [vmem:[#allocation32_spill] sm:$0xff] %v3273_v28  ;;  %2378 = vmatpush1.bf16.msra.mxu0 %v3223_v54  ;;  %v264_v46 = vsub.f32 %v3167_v57, %v5155_v63  ;;  %v259_v0 = vand.u32 4294901760, %v258_v35  ;;  %v5156_v13 = vand.u32 4294901760, %v3171_v59  ;;  %v206_v54 = vand.u32 4294901760, %v205_v4 }
  0x55   :  { %2380 = vmatprep.subr.bf16.mxu0 %v3264_v47  ;;  %v282_v47 = vsub.f32 %v3173_v60, %v4865_v10  ;;  %v288_v63 = vsub.f32 %v3175_v1, %v4870_v26  ;;  %v300_v22 = vsub.f32 %v3177_v2, %v4875_v45  ;;  %v3311_v35 = vsub.f32 %v89_v56, %v163_v12 }
  0x56   :  { %v270_v7 = vsub.f32 %v3171_v59, %v5156_v13  ;;  %v2385_v13 = vpack.c.bf16 %v235_v32, %v223_v8  ;;  %v4886_v53 = vand.u32 4294901760, %v3187_v17  ;;  %v4880_v10 = vand.u32 4294901760, %v3189_v18 }
  0x57   :  { %v2387_v4 = vpack.c.bf16 %v253_v5, %v241_v6  ;;  %v265_v42 = vand.u32 4294901760, %v264_v46  ;;  %v277_v39 = vand.u32 4294901760, %v276_v25  ;;  %v4879_v26 = vand.u32 4294901760, %v3191_v19 }
  0x58   :  { %2382 = vmatpush1.bf16.msra.mxu0 %v3273_v28  ;;  %v2389_v31 = vpack.c.bf16 %v259_v0, %v247_v11  ;;  %v271_v21 = vand.u32 4294901760, %v270_v7  ;;  %v283_v45 = vand.u32 4294901760, %v282_v47  ;;  %v4878_v14 = vand.u32 4294901760, %v3195_v23 }
  0x59   :  { %2384 = vmatprep.subr.bf16.mxu0 %v2383_v43  ;;  %v289_v28 = vand.u32 4294901760, %v288_v63  ;;  %v301_v56 = vand.u32 4294901760, %v300_v22  ;;  %v5157_v12 = vand.u32 4294901760, %v3185_v15  ;;  %v4881_v32 = vand.u32 4294901760, %v3198_v27 }
  0x5a   :  { %v306_v5 = vsub.f32 %v3187_v17, %v4886_v53  ;;  %v312_v6 = vsub.f32 %v3189_v18, %v4880_v10  ;;  %v324_v47 = vsub.f32 %v3191_v19, %v4879_v26  ;;  %v5158_v22 = vmov 0.0  }
  0x5b   :  { %207 = vmatmul.mubr.f32.vlgmr.msra.gmra.mrb[0].mxu0 %v206_v54  ;;  %v294_v8 = vsub.f32 %v3185_v15, %v5157_v12  ;;  %v2391_v54 = vpack.c.bf16 %v277_v39, %v265_v42  ;;  %v318_v11 = vsub.f32 %v3195_v23, %v4878_v14  ;;  %v4885_v43 = vand.u32 4294901760, %v3202_v29 }
  0x5c   :  { %2386 = vmatpush1.bf16.msra.mxu0 %v2385_v13  ;;  %437 = vmatprep.mubr.f32.mxu0 %v5158_v22  ;;  %v4884_v46 = vand.u32 4294901760, %v3204_v30  ;;  %v5159_v25 = vand.u32 4294901760, %v3227_v61  ;;  %v330_v7 = vsub.f32 %v3198_v27, %v4881_v32  ;;  %v4882_v63 = vand.u32 4294901760, %v3209_v33 }
  0x5d   :  { %2388 = vmatprep.subr.bf16.mxu0 %v2387_v4  ;;  %v4883_v39 = vand.u32 4294901760, %v3211_v34  ;;  %v2393_v42 = vpack.c.bf16 %v283_v45, %v271_v21  ;;  %v2395_v13 = vpack.c.bf16 %v301_v56, %v289_v28  ;;  %v295_v4 = vand.u32 4294901760, %v294_v8 }
  0x5e   :  { %v3339_v0 = vsub.f32 %v3227_v61, %v5159_v25  ;;  %v4889_v12 = vand.u32 4294901760, %v3215_v44  ;;  %v307_v14 = vand.u32 4294901760, %v306_v5  ;;  %v313_v26 = vand.u32 4294901760, %v312_v6 }
  0x5f   :  { %v325_v10 = vand.u32 4294901760, %v324_v47  ;;  %v371_v61 = vand.u32 4294901760, %v3221_v49  ;;  %v319_v25 = vand.u32 4294901760, %v318_v11  ;;  %v336_v32 = vsub.f32 %v3202_v29, %v4885_v43 }
  0x60   :  { %2390 = vmatpush1.bf16.msra.mxu0 %v2389_v31  ;;  %v348_v21 = vsub.f32 %v3204_v30, %v4884_v46  ;;  %v365_v28 = vand.u32 4294901760, %v3225_v55  ;;  %v331_v45 = vand.u32 4294901760, %v330_v7  ;;  %v342_v31 = vsub.f32 %v3209_v33, %v4882_v63 }
  0x61   :  { %2392 = vmatprep.subr.bf16.mxu0 %v2391_v54  ;;  %v354_v56 = vsub.f32 %v3211_v34, %v4883_v39  ;;  %v377_v8 = vand.u32 4294901760, %v3231_v62  ;;  %v360_v5 = vsub.f32 %v3215_v44, %v4889_v12  ;;  %v372_v6 = vsub.f32 %v3221_v49, %v371_v61 }
  0x62   :  { %v383_v47 = vand.u32 4294901760, %v3266_v3  ;;  %v395_v54 = vand.u32 4294901760, %v3268_v24  ;;  %v2397_v11 = vpack.c.bf16 %v307_v14, %v295_v4  ;;  %v366_v7 = vsub.f32 %v3225_v55, %v365_v28 }
  0x63   :  { %v378_v63 = vsub.f32 %v3231_v62, %v377_v8  ;;  %v389_v39 = vand.u32 4294901760, %v3311_v35  ;;  %v2399_v46 = vpack.c.bf16 %v325_v10, %v313_v26  ;;  %v337_v43 = vand.u32 4294901760, %v336_v32 }
  0x64   :  { %2394 = vmatpush1.bf16.msra.mxu0 %v2393_v42  ;;  %v349_v53 = vand.u32 4294901760, %v348_v21  ;;  %v2401_v20 = vpack.c.bf16 %v331_v45, %v319_v25  ;;  %v343_v12 = vand.u32 4294901760, %v342_v31  ;;  %v355_v9 = vand.u32 4294901760, %v354_v56 }
  0x65   :  { %2396 = vmatprep.subr.bf16.mxu0 %v2395_v13  ;;  %v361_v16 = vand.u32 4294901760, %v360_v5  ;;  %v373_v22 = vand.u32 4294901760, %v372_v6  ;;  %v384_v49 = vsub.f32 %v3266_v3, %v383_v47  ;;  %v396_v42 = vsub.f32 %v3268_v24, %v395_v54 }
  0x66   :  { %v367_v14 = vand.u32 4294901760, %v366_v7  ;;  %v379_v4 = vand.u32 4294901760, %v378_v63  ;;  %v390_v62 = vsub.f32 %v3311_v35, %v389_v39  ;;  %v401_v55 = vand.u32 4294901760, %v3339_v0 }
  0x67   :  { %v2403_v10 = vpack.c.bf16 %v349_v53, %v337_v43  ;;  %v2405_v26 = vpack.c.bf16 %v355_v9, %v343_v12  ;;  %v2407_v32 = vpack.c.bf16 %v373_v22, %v361_v16  ;;  %v385_v13 = vand.u32 4294901760, %v384_v49 }
  0x68   :  { %2398 = vmatpush1.bf16.msra.mxu0 %v2397_v11  ;;  %v397_v25 = vand.u32 4294901760, %v396_v42  ;;  %v2409_v21 = vpack.c.bf16 %v379_v4, %v367_v14  ;;  %v391_v45 = vand.u32 4294901760, %v390_v62  ;;  %v402_v31 = vsub.f32 %v3339_v0, %v401_v55 }
  0x69   :  { %2400 = vmatprep.subr.bf16.mxu0 %v2399_v46  ;;  %v5160_v56 = vand.u32 4294901760, %v3143_v36  ;;  %v5161_v5 = vand.u32 4294901760, %v3145_v37  ;;  %v5162_v6 = vand.u32 4294901760, %v3147_v38  ;;  %v5163_v53 = vand.u32 4294901760, %v3151_v40 }
  0x6a   :  { %v5164_v16 = vand.u32 4294901760, %v3153_v41  ;;  %v5166_v62 = vand.u32 4294901760, %v3160_v51  ;;  %v5167_v22 = vand.u32 4294901760, %v3162_v52  ;;  %v5168_v46 = vand.u32 4294901760, %v3167_v57 }
  0x6b   :  { %v3380_v63 = vpack.c.bf16 %v5161_v5, %v5160_v56  ;;  %v3386_v9 = vpack.c.bf16 %v5163_v53, %v5162_v6  ;;  %v5169_v12 = vand.u32 4294901760, %v3169_v58  ;;  %v5170_v7 = vand.u32 4294901760, %v3171_v59 }
  0x6c   :  { %2402 = vmatpush1.bf16.msra.mxu0 %v2401_v20  ;;  %v5165_v20 = vand.u32 4294901760, %v3158_v50  ;;  %v3398_v43 = vpack.c.bf16 %v5167_v22, %v5166_v62  ;;  %v5171_v42 = vand.u32 4294901760, %v3173_v60  ;;  %v5172_v4 = vand.u32 4294901760, %v3175_v1 }
  0x6d   :  { %2404 = vmatprep.subr.bf16.mxu0 %v2403_v10  ;;  %v3404_v11 = vpack.c.bf16 %v5169_v12, %v5168_v46  ;;  %v5173_v10 = vand.u32 4294901760, %v3177_v2  ;;  %v5174_v5 = vand.u32 4294901760, %v3185_v15  ;;  %v5175_v6 = vand.u32 4294901760, %v3187_v17 }
  0x6e   :  { %v3392_v49 = vpack.c.bf16 %v5165_v20, %v5164_v16  ;;  %v3410_v14 = vpack.c.bf16 %v5171_v42, %v5170_v7  ;;  %v5176_v16 = vand.u32 4294901760, %v3189_v18  ;;  %v5177_v20 = vand.u32 4294901760, %v3191_v19 }
  0x6f   :  { %v3416_v56 = vpack.c.bf16 %v5173_v10, %v5172_v4  ;;  %v3422_v53 = vpack.c.bf16 %v5175_v6, %v5174_v5  ;;  %v5179_v22 = vand.u32 4294901760, %v3195_v23  ;;  %v5180_v46 = vand.u32 4294901760, %v3198_v27 }
  0x70   :  { %v3428_v62 = vpack.c.bf16 %v5177_v20, %v5176_v16  ;;  %v5182_v7 = vand.u32 4294901760, %v3202_v29  ;;  %v5183_v42 = vand.u32 4294901760, %v3204_v30  ;;  %v5184_v10 = vand.u32 4294901760, %v3209_v33  ;;  %2406 = vmatpush1.bf16.msra.mxu0 %v2405_v26 }
  0x71   :  { %v3434_v12 = vpack.c.bf16 %v5180_v46, %v5179_v22  ;;  %v5185_v5 = vand.u32 4294901760, %v3211_v34  ;;  %v5186_v16 = vand.u32 4294901760, %v3215_v44  ;;  %v3452_v22 = vpack.c.bf16 %v377_v8, %v365_v28  ;;  %2408 = vmatprep.subr.bf16.mxu0 %v2407_v32 }
  0x72   :  { %5178 = vst [vmem:[#allocation33_spill] sm:$0xff] %v3428_v62  ;;  %v3440_v4 = vpack.c.bf16 %v5183_v42, %v5182_v7  ;;  %v403_v62 = vand.u32 4294901760, %v402_v31  ;;  %v3454_v46 = vpack.c.bf16 %v395_v54, %v383_v47  ;;  %v2411_v7 = vpack.c.bf16 %v397_v25, %v385_v13  ;;  %v3498_v13 = vld [vmem:[#allocation7 + $0x10] sm:$0xff] }
  0x73   :  { %5181 = vst [vmem:[#allocation34_spill] sm:$0xff] %v3434_v12  ;;  %v3446_v6 = vpack.c.bf16 %v5185_v5, %v5184_v10  ;;  %v3450_v20 = vpack.c.bf16 %v371_v61, %v5186_v16  ;;  %v3456_v12 = vpack.c.bf16 %v401_v55, %v389_v39  ;;  %v2415_v10 = vpack.c.bf16 %v3145_v37, %v3143_v36 }
  0x74   :  { %5187 = vst [vmem:[#allocation35_spill] sm:$0xff] %v3454_v46  ;;  %2410 = vmatpush1.bf16.msra.mxu0 %v2409_v21  ;;  %v2413_v42 = vpack.c.bf16 %v403_v62, %v391_v45  ;;  %v2417_v61 = vpack.c.bf16 %v3151_v40, %v3147_v38  ;;  %v2419_v28 = vpack.c.bf16 %v3158_v50, %v3153_v41  ;;  %v5192_v54 = vmov 0.0   ;;  %v3501_v21 = vld [vmem:[#allocation7 + $0x28] sm:$0xff]  ;;  %v3503_v45 = vld [vmem:[#allocation7 + $0x38] sm:$0xff] }
  0x75   :  { %5188 = vst [vmem:[#allocation36_spill] sm:$0xff] %v3456_v12  ;;  %2412 = vmatprep.subr.bf16.mxu0 %v2411_v7  ;;  %v2421_v55 = vpack.c.bf16 %v3162_v52, %v3160_v51  ;;  %v2423_v39 = vpack.c.bf16 %v3169_v58, %v3167_v57  ;;  %v2425_v8 = vpack.c.bf16 %v3173_v60, %v3171_v59  ;;  %v5189_v51 = vld [vmem:[#allocation26_spill] sm:$0xff]  ;;  %v5190_v57 = vld [vmem:[#allocation28_spill] sm:$0xff]  ;;  %v5191_v58 = vld [vmem:[#allocation29_spill] sm:$0xff]  ;;  %v4902_v62 = vand.u32 4294901760, %v3498_v13 }
  0x76   :  { %v2427_v36 = vpack.c.bf16 %v3177_v2, %v3175_v1  ;;  %v3487_v60 = vld [vmem:[#allocation7 + $0x8] sm:$0xff]  ;;  %v3489_v1 = vld [vmem:[#allocation7 + $0x18] sm:$0xff]  ;;  %v3491_v2 = vld [vmem:[#allocation7] sm:$0xff]  ;;  %v4900_v5 = vand.u32 4294901760, %v3501_v21  ;;  %v4901_v16 = vand.u32 4294901760, %v3503_v45 }
  0x77   :  { %v1038_v26 = vand.u32 4294901760, %v3487_v60  ;;  %v1042_v32 = vand.u32 4294901760, %v3489_v1  ;;  %v4903_v25 = vand.u32 4294901760, %v3491_v2  ;;  %v3510_v7 = vld [vmem:[#allocation7 + $0x20] sm:$0xff]  ;;  %v3529_v47 = vsub.f32 %v3498_v13, %v4902_v62  ;;  %v3590_v12 = vld [vmem:[#allocation7 + $0x50] sm:$0xff]  ;;  %v3594_v46 = vld [vmem:[#allocation7 + $0x68] sm:$0xff] }
  0x78   :  { %2414 = vmatpush1.bf16.msra.mxu0 %v2413_v42  ;;  %v3512_v42 = vld [vmem:[#allocation7 + $0x30] sm:$0xff]  ;;  %v4904_v31 = vand.u32 4294901760, %v3510_v7 }
  0x79   :  { %2416 = vmatprep.subr.bf16.mxu0 %v2415_v10  ;;  %v3515_v10 = vsub.f32 %v3487_v60, %v1038_v26  ;;  %5196 = vst [vmem:[#allocation37_spill] sm:$0xff] %v3529_v47  ;;  %v3534_v60 = vsub.f32 %v3501_v21, %v4900_v5  ;;  %v4905_v59 = vand.u32 4294901760, %v3512_v42  ;;  %v4915_v5 = vand.u32 4294901760, %v3529_v47 }
  0x7a   :  { %v3548_v40 = vsub.f32 %v3510_v7, %v4904_v31 }
  0x7b   :  { %439 = vmatmul.mubr.f32.vlgmr.msra.gmra.mrb[0].mxu0 %v3219_v48  ;;  %5193 = vst [vmem:[#allocation26_spill] sm:$0xff] %v3515_v10  ;;  %5197 = vst [vmem:[#allocation38_spill] sm:$0xff] %v3534_v60  ;;  %v4906_v52 = vand.u32 4294901760, %v3515_v10  ;;  %v1204_v37 = vsub.f32 %v3529_v47, %v4915_v5 }
  0x7c   :  { %2418 = vmatpush1.bf16.msra.mxu0 %v2417_v61  ;;  %573 = vmatprep.mubr.f32.mxu0 %v5192_v54  ;;  %v3518_v61 = vsub.f32 %v3489_v1, %v1042_v32  ;;  %v3539_v1 = vsub.f32 %v3503_v45, %v4901_v16  ;;  %5199 = vst [vmem:[#allocation40_spill] sm:$0xff] %v3548_v40  ;;  %v4918_v16 = vand.u32 4294901760, %v3534_v60  ;;  %v5201_v5 = vand.u32 4294901760, %v3548_v40 }
  0x7d   :  { %2420 = vmatprep.subr.bf16.mxu0 %v2419_v28  ;;  %v3523_v28 = vsub.f32 %v3491_v2, %v4903_v25  ;;  %v1186_v25 = vsub.f32 %v3515_v10, %v4906_v52  ;;  %v3580_v10 = vld [vmem:[#allocation7 + $0x58] sm:$0xff] }
  0x7e   :  { %5194 = vst [vmem:[#allocation28_spill] sm:$0xff] %v3518_v61  ;;  %5198 = vst [vmem:[#allocation39_spill] sm:$0xff] %v3539_v1  ;;  %v4907_v50 = vand.u32 4294901760, %v3518_v61  ;;  %v4923_v62 = vand.u32 4294901760, %v3539_v1  ;;  %v1216_v47 = vsub.f32 %v3548_v40, %v5201_v5  ;;  %v3598_v5 = vpack.c.bf16 %v1042_v32, %v1038_v26  ;;  %v3615_v26 = vld [vmem:[#allocation7 + $0x60] sm:$0xff] }
  0x7f   :  { %5195 = vst [vmem:[#allocation29_spill] sm:$0xff] %v3523_v28  ;;  %v4912_v41 = vand.u32 4294901760, %v3523_v28  ;;  %v5207_v32 = vand.u32 4294901760, %v3498_v13 }
  0x80   :  { %2422 = vmatpush1.bf16.msra.mxu0 %v2421_v55  ;;  %v3556_v55 = vsub.f32 %v3512_v42, %v4905_v59  ;;  %v1198_v31 = vsub.f32 %v3518_v61, %v4907_v50  ;;  %v1210_v59 = vsub.f32 %v3534_v60, %v4918_v16  ;;  %v1222_v52 = vsub.f32 %v3539_v1, %v4923_v62  ;;  %v3578_v61 = vld [vmem:[#allocation7 + $0x48] sm:$0xff]  ;;  %v3588_v1 = vld [vmem:[#allocation7 + $0x40] sm:$0xff] }
  0x81   :  { %2424 = vmatprep.subr.bf16.mxu0 %v2423_v39  ;;  %v1192_v39 = vsub.f32 %v3523_v28, %v4912_v41  ;;  %v1187_v41 = vand.u32 4294901760, %v1186_v25  ;;  %v1205_v16 = vand.u32 4294901760, %v1204_v37  ;;  %v1217_v25 = vand.u32 4294901760, %v1216_v47 }
  0x82   :  { %5200 = vst [vmem:[#allocation41_spill] sm:$0xff] %v3556_v55  ;;  %v4926_v50 = vand.u32 4294901760, %v3556_v55  ;;  %v1199_v38 = vand.u32 4294901760, %v1198_v31  ;;  %v1211_v60 = vand.u32 4294901760, %v1210_v59  ;;  %v1223_v48 = vand.u32 4294901760, %v1222_v52 }
  0x83   :  { %v1193_v28 = vand.u32 4294901760, %v1192_v39  ;;  %v4939_v31 = vand.u32 4294901760, %v3578_v61  ;;  %v4938_v39 = vand.u32 4294901760, %v3580_v10  ;;  %v4935_v47 = vand.u32 4294901760, %v3590_v12 }
  0x84   :  { %2426 = vmatpush1.bf16.msra.mxu0 %v2425_v8  ;;  %v1228_v62 = vsub.f32 %v3556_v55, %v4926_v50  ;;  %v2607_v8 = vpack.c.bf16 %v1199_v38, %v1187_v41  ;;  %v2611_v52 = vpack.c.bf16 %v1223_v48, %v1211_v60  ;;  %v5202_v50 = vpack.c.bf16 %v3187_v17, %v3185_v15 }
  0x85   :  { %2428 = vmatprep.subr.bf16.mxu0 %v2427_v36  ;;  %v3596_v36 = vld [vmem:[#allocation7 + $0x78] sm:$0xff]  ;;  %v2609_v37 = vpack.c.bf16 %v1205_v16, %v1193_v28  ;;  %v3606_v38 = vsub.f32 %v3578_v61, %v4939_v31  ;;  %v3611_v41 = vsub.f32 %v3580_v10, %v4938_v39  ;;  %v4937_v48 = vand.u32 4294901760, %v3588_v1  ;;  %v3712_v31 = vld [vmem:[#allocation7 + $0x80] sm:$0xff] }
  0x86   :  { %v1229_v59 = vand.u32 4294901760, %v1228_v62  ;;  %2608 = vmatprep.subr.bf16.mxu1 %v2607_v8  ;;  %v5205_v15 = vpack.c.bf16 %v3191_v19, %v3189_v18  ;;  %v4930_v16 = vand.u32 4294901760, %v3594_v46  ;;  %v4927_v28 = vand.u32 4294901760, %v3596_v36 }
  0x87   :  { %5203 = vst [vmem:[#allocation42_spill] sm:$0xff] %v3606_v38  ;;  %5204 = vst [vmem:[#allocation43_spill] sm:$0xff] %v3611_v41  ;;  %2610 = vmatpush1.bf16.msra.mxu1 %v2609_v37  ;;  %v4929_v60 = vand.u32 4294901760, %v3606_v38  ;;  %v4928_v8 = vand.u32 4294901760, %v3611_v41  ;;  %v3633_v18 = vsub.f32 %v3588_v1, %v4937_v48  ;;  %v3638_v19 = vsub.f32 %v3590_v12, %v4935_v47 }
  0x88   :  { %2430 = vmatpush1.bf16.msra.mxu0 %v5202_v50  ;;  %v2613_v17 = vpack.c.bf16 %v1229_v59, %v1217_v25  ;;  %v5206_v50 = vand.u32 4294901760, %v3491_v2  ;;  %2612 = vmatprep.subr.bf16.mxu1 %v2611_v52  ;;  %v3640_v2 = vld [vmem:[#allocation7 + $0x70] sm:$0xff]  ;;  %v3645_v13 = vsub.f32 %v3594_v46, %v4930_v16  ;;  %v3650_v25 = vsub.f32 %v3596_v36, %v4927_v28 }
  0x89   :  { %2432 = vmatprep.subr.bf16.mxu0 %v5205_v15  ;;  %5208 = vst [vmem:[#allocation44_spill] sm:$0xff] %v3633_v18  ;;  %5209 = vst [vmem:[#allocation45_spill] sm:$0xff] %v3638_v19  ;;  %v5212_v37 = vand.u32 4294901760, %v3501_v21  ;;  %v5213_v52 = vand.u32 4294901760, %v3503_v45  ;;  %v4934_v15 = vand.u32 4294901760, %v3615_v26  ;;  %v1246_v28 = vsub.f32 %v3611_v41, %v4928_v8 }
  0x8a   :  { %v3624_v62 = vpack.c.bf16 %v5207_v32, %v5206_v50  ;;  %5210 = vst [vmem:[#allocation46_spill] sm:$0xff] %v3645_v13  ;;  %5211 = vst [vmem:[#allocation47_spill] sm:$0xff] %v3650_v25  ;;  %v5214_v50 = vpack.c.bf16 %v3198_v27, %v3195_v23  ;;  %v1234_v32 = vsub.f32 %v3606_v38, %v4929_v60  ;;  %v4931_v21 = vand.u32 4294901760, %v3633_v18 }
  0x8b   :  { %v3656_v59 = vpack.c.bf16 %v5213_v52, %v5212_v37  ;;  %v4932_v45 = vand.u32 4294901760, %v3638_v19  ;;  %v5215_v37 = vpack.c.bf16 %v3204_v30, %v3202_v29  ;;  %2614 = vmatpush1.bf16.msra.mxu1 %v2613_v17  ;;  %v4933_v23 = vand.u32 4294901760, %v3645_v13 }
  0x8c   :  { %2434 = vmatpush1.bf16.msra.mxu0 %v5214_v50  ;;  %v4936_v27 = vand.u32 4294901760, %v3650_v25  ;;  %v4940_v52 = vand.u32 4294901760, %v3640_v2  ;;  %v3679_v50 = vsub.f32 %v3615_v26, %v4934_v15  ;;  %v1235_v8 = vand.u32 4294901760, %v1234_v32  ;;  %v3699_v32 = vld [vmem:[#allocation7 + $0x88] sm:$0xff] }
  0x8d   :  { %2436 = vmatprep.subr.bf16.mxu0 %v5215_v37  ;;  %v1247_v60 = vand.u32 4294901760, %v1246_v28  ;;  %v1240_v16 = vsub.f32 %v3633_v18, %v4931_v21  ;;  %v1252_v29 = vsub.f32 %v3638_v19, %v4932_v45  ;;  %v1258_v30 = vsub.f32 %v3645_v13, %v4933_v23  ;;  %v3701_v21 = vld [vmem:[#allocation7 + $0x98] sm:$0xff] }
  0x8e   :  { %5216 = vst [vmem:[#allocation48_spill] sm:$0xff] %v3679_v50  ;;  %v1270_v17 = vsub.f32 %v3650_v25, %v4936_v27  ;;  %v3697_v28 = vsub.f32 %v3640_v2, %v4940_v52  ;;  %v5218_v45 = vpack.c.bf16 %v3211_v34, %v3209_v33  ;;  %v5219_v27 = vand.u32 4294901760, %v3510_v7  ;;  %v3953_v18 = vld [vmem:[#allocation7 + $0x118] sm:$0xff] }
  0x8f   :  { %v2615_v23 = vpack.c.bf16 %v1247_v60, %v1235_v8  ;;  %v1241_v15 = vand.u32 4294901760, %v1240_v16  ;;  %v1253_v47 = vand.u32 4294901760, %v1252_v29  ;;  %v5220_v48 = vand.u32 4294901760, %v3512_v42  ;;  %v3721_v60 = vld [vmem:[#allocation7 + $0x90] sm:$0xff] }
  0x90   :  { %5217 = vst [vmem:[#allocation49_spill] sm:$0xff] %v3697_v28  ;;  %2438 = vmatpush1.bf16.msra.mxu0 %v5218_v45  ;;  %v5221_v52 = vpack.c.bf16 %v5189_v51, %v3215_v44  ;;  %v1259_v37 = vand.u32 4294901760, %v1258_v30  ;;  %v1271_v25 = vand.u32 4294901760, %v1270_v17  ;;  %v5222_v33 = vand.u32 4294901760, %v3679_v50  ;;  %v3731_v45 = vld [vmem:[#allocation7 + $0xa8] sm:$0xff] }
  0x91   :  { %v3710_v39 = vpack.c.bf16 %v5220_v48, %v5219_v27  ;;  %v4944_v16 = vand.u32 4294901760, %v3697_v28  ;;  %2616 = vmatprep.subr.bf16.mxu1 %v2615_v23  ;;  %v2617_v7 = vpack.c.bf16 %v1253_v47, %v1241_v15  ;;  %v4954_v42 = vand.u32 4294901760, %v3699_v32  ;;  %v3733_v27 = vld [vmem:[#allocation7 + $0xb8] sm:$0xff] }
  0x92   :  { %2440 = vmatprep.subr.bf16.mxu0 %v5221_v52  ;;  %v1264_v34 = vsub.f32 %v3679_v50, %v5222_v33  ;;  %v4953_v48 = vand.u32 4294901760, %v3701_v21  ;;  %v5223_v8 = vand.u32 4294901760, %v3578_v61  ;;  %v5224_v44 = vand.u32 4294901760, %v3580_v10 }
  0x93   :  { %v2619_v52 = vpack.c.bf16 %v1271_v25, %v1259_v37  ;;  %v1276_v47 = vsub.f32 %v3697_v28, %v4944_v16  ;;  %v4950_v15 = vand.u32 4294901760, %v3712_v31  ;;  %v5225_v23 = vpack.c.bf16 %v5191_v58, %v5190_v57  ;;  %2618 = vmatpush1.bf16.msra.mxu1 %v2617_v7 }
  0x94   :  { %v3729_v51 = vpack.c.bf16 %v5224_v44, %v5223_v8  ;;  %v1265_v29 = vand.u32 4294901760, %v1264_v34  ;;  %v3745_v10 = vsub.f32 %v3699_v32, %v4954_v42  ;;  %v3750_v61 = vsub.f32 %v3701_v21, %v4953_v48 }
  0x95   :  { %2442 = vmatpush1.bf16.msra.mxu0 %v5225_v23  ;;  %v4949_v25 = vand.u32 4294901760, %v3721_v60  ;;  %v5228_v30 = vand.u32 4294901760, %v3588_v1  ;;  %v5229_v17 = vand.u32 4294901760, %v3590_v12  ;;  %v5231_v57 = vpack.c.bf16 %v3268_v24, %v3266_v3  ;;  %2620 = vmatprep.subr.bf16.mxu1 %v2619_v52  ;;  %v3769_v1 = vld [vmem:[#allocation7 + $0xa0] sm:$0xff] }
  0x96   :  { %5226 = vst [vmem:[#allocation50_spill] sm:$0xff] %v3745_v10  ;;  %5227 = vst [vmem:[#allocation51_spill] sm:$0xff] %v3750_v61  ;;  %v1277_v58 = vand.u32 4294901760, %v1276_v47  ;;  %v3765_v33 = vsub.f32 %v3712_v31, %v4950_v15  ;;  %v4947_v34 = vand.u32 4294901760, %v3731_v45  ;;  %v4945_v7 = vand.u32 4294901760, %v3733_v27  ;;  %v3784_v47 = vld [vmem:[#allocation7 + $0xb0] sm:$0xff] }
  0x97   :  { %v3757_v37 = vpack.c.bf16 %v5229_v17, %v5228_v30  ;;  %2444 = vmatprep.subr.bf16.mxu0 %v5231_v57  ;;  %v4943_v12 = vand.u32 4294901760, %v3745_v10  ;;  %v4946_v8 = vand.u32 4294901760, %v3750_v61  ;;  %v3776_v3 = vsub.f32 %v3721_v60, %v4949_v25 }
  0x98   :  { %5232 = vst [vmem:[#allocation53_spill] sm:$0xff] %v3765_v33  ;;  %v5234_v24 = vand.u32 4294901760, %v3594_v46  ;;  %v5235_v44 = vand.u32 4294901760, %v3596_v36  ;;  %v2621_v23 = vpack.c.bf16 %v1277_v58, %v1265_v29  ;;  %v4948_v30 = vand.u32 4294901760, %v3765_v33 }
  0x99   :  { %5230 = vst [vmem:[#allocation52_spill] sm:$0xff] %v3757_v37  ;;  %5233 = vst [vmem:[#allocation54_spill] sm:$0xff] %v3776_v3  ;;  %v3790_v17 = vsub.f32 %v3731_v45, %v4947_v34  ;;  %v3795_v57 = vsub.f32 %v3733_v27, %v4945_v7  ;;  %v5239_v46 = vpack.c.bf16 %v3339_v0, %v3311_v35  ;;  %v4951_v58 = vand.u32 4294901760, %v3776_v3  ;;  %v3823_v34 = vld [vmem:[#allocation7 + $0xc8] sm:$0xff] }
  0x9a   :  { %v3782_v52 = vpack.c.bf16 %v5235_v44, %v5234_v24  ;;  %v1282_v36 = vsub.f32 %v3745_v10, %v4943_v12  ;;  %v1294_v29 = vsub.f32 %v3750_v61, %v4946_v8  ;;  %v4952_v24 = vand.u32 4294901760, %v3769_v1  ;;  %v5240_v44 = vld [vmem:[#allocation12_spill] sm:$0xff]  ;;  %2622 = vmatpush1.bf16.msra.mxu1 %v2621_v23 }
  0x9b   :  { %5237 = vst [vmem:[#allocation56_spill] sm:$0xff] %v3790_v17  ;;  %5238 = vst [vmem:[#allocation57_spill] sm:$0xff] %v3795_v57  ;;  %2446 = vmatpush1.bf16.msra.mxu0 %v5239_v46  ;;  %v1288_v35 = vsub.f32 %v3765_v33, %v4948_v30  ;;  %v4955_v0 = vand.u32 4294901760, %v3790_v17  ;;  %v4958_v46 = vand.u32 4294901760, %v3795_v57  ;;  %v4961_v12 = vand.u32 4294901760, %v3784_v47  ;;  %v5242_v30 = vld [vmem:[#allocation30_spill] sm:$0xff] }
  0x9c   :  { %5236 = vst [vmem:[#allocation55_spill] sm:$0xff] %v3782_v52  ;;  %2448 = vmatprep.subr.bf16.mxu0 %v5240_v44  ;;  %v1283_v16 = vand.u32 4294901760, %v1282_v36  ;;  %v1295_v7 = vand.u32 4294901760, %v1294_v29  ;;  %v1300_v8 = vsub.f32 %v3776_v3, %v4951_v58  ;;  %v3821_v23 = vsub.f32 %v3769_v1, %v4952_v24  ;;  %v3837_v58 = vld [vmem:[#allocation7 + $0xd8] sm:$0xff]  ;;  %v5244_v24 = vld [vmem:[#allocation13_spill] sm:$0xff] }
  0x9d   :  { %v1289_v25 = vand.u32 4294901760, %v1288_v35  ;;  %v1306_v15 = vsub.f32 %v3790_v17, %v4955_v0  ;;  %v1318_v36 = vsub.f32 %v3795_v57, %v4958_v46  ;;  %v3835_v29 = vsub.f32 %v3784_v47, %v4961_v12  ;;  %v3848_v57 = vld [vmem:[#allocation7 + $0xc0] sm:$0xff]  ;;  %v5248_v12 = vld [vmem:[#allocation14_spill] sm:$0xff] }
  0x9e   :  { %5241 = vst [vmem:[#allocation12_spill] sm:$0xff] %v3821_v23  ;;  %576 = vmatmul.mubr.f32.vlgmr.msra.gmra.mrb[0].mxu0 %v5242_v30  ;;  %v2623_v35 = vpack.c.bf16 %v1295_v7, %v1283_v16  ;;  %v1301_v48 = vand.u32 4294901760, %v1300_v8  ;;  %v4970_v42 = vand.u32 4294901760, %v3821_v23  ;;  %v5245_v0 = vand.u32 4294901760, %v3615_v26  ;;  %v3853_v16 = vld [vmem:[#allocation7 + $0xd0] sm:$0xff] }
  0x9f   :  { %5243 = vst [vmem:[#allocation30_spill] sm:$0xff] %v3835_v29  ;;  %2450 = vmatpush1.bf16.msra.mxu0 %v5244_v24  ;;  %678 = vmatprep.mubr.f32.mxu0 %v5192_v54  ;;  %v5246_v17 = vand.u32 4294901760, %v3640_v2  ;;  %v1307_v3 = vand.u32 4294901760, %v1306_v15  ;;  %v1319_v33 = vand.u32 4294901760, %v1318_v36  ;;  %v4971_v61 = vand.u32 4294901760, %v3835_v29 }
  0xa0   :  { %2452 = vmatprep.subr.bf16.mxu0 %v5248_v12  ;;  %v4972_v10 = vand.u32 4294901760, %v3823_v34  ;;  %2624 = vmatprep.subr.bf16.mxu1 %v2623_v35  ;;  %v2625_v7 = vpack.c.bf16 %v1301_v48, %v1289_v25  ;;  %v1312_v26 = vsub.f32 %v3821_v23, %v4970_v42  ;;  %v4975_v2 = vand.u32 4294901760, %v3837_v58  ;;  %v3876_v42 = vld [vmem:[#allocation7 + $0xf8] sm:$0xff] }
  0xa1   :  { %v3846_v46 = vpack.c.bf16 %v5246_v17, %v5245_v0  ;;  %v5249_v8 = vand.u32 4294901760, %v3699_v32  ;;  %v5250_v17 = vand.u32 4294901760, %v3701_v21  ;;  %v3865_v0 = vld [vmem:[#allocation7 + $0xe8] sm:$0xff]  ;;  %v2627_v36 = vpack.c.bf16 %v1319_v33, %v1307_v3  ;;  %v5253_v32 = vld [vmem:[#allocation15_spill] sm:$0xff] }
  0xa2   :  { %v1324_v35 = vsub.f32 %v3835_v29, %v4971_v61  ;;  %v3873_v48 = vsub.f32 %v3823_v34, %v4972_v10  ;;  %2626 = vmatpush1.bf16.msra.mxu1 %v2625_v7  ;;  %v1313_v21 = vand.u32 4294901760, %v1312_v26  ;;  %v3882_v33 = vsub.f32 %v3837_v58, %v4975_v2  ;;  %v5258_v10 = vld [vmem:[#allocation16_spill] sm:$0xff] }
  0xa3   :  { %5247 = vst [vmem:[#allocation13_spill] sm:$0xff] %v3846_v46  ;;  %v3863_v15 = vpack.c.bf16 %v5250_v17, %v5249_v8  ;;  %2454 = vmatpush1.bf16.msra.mxu0 %v5253_v32  ;;  %v5255_v8 = vand.u32 4294901760, %v3712_v31  ;;  %v5256_v17 = vand.u32 4294901760, %v3721_v60  ;;  %2628 = vmatprep.subr.bf16.mxu1 %v2627_v36  ;;  %v5259_v26 = vand.u32 4294901760, %v3848_v57  ;;  %v3899_v3 = vld [vmem:[#allocation7 + $0xe0] sm:$0xff]  ;;  %v5269_v36 = vld [vmem:[#allocation17_spill] sm:$0xff] }
  0xa4   :  { %5252 = vst [vmem:[#allocation58_spill] sm:$0xff] %v3873_v48  ;;  %5254 = vst [vmem:[#allocation15_spill] sm:$0xff] %v3882_v33  ;;  %2456 = vmatprep.subr.bf16.mxu0 %v5258_v10  ;;  %v1325_v25 = vand.u32 4294901760, %v1324_v35  ;;  %v5261_v60 = vand.u32 4294901760, %v3853_v16  ;;  %v5263_v35 = vand.u32 4294901760, %v3731_v45  ;;  %v5266_v23 = vand.u32 4294901760, %v3873_v48 }
  0xa5   :  { %5251 = vst [vmem:[#allocation14_spill] sm:$0xff] %v3863_v15  ;;  %v3889_v61 = vpack.c.bf16 %v5256_v17, %v5255_v8  ;;  %v3896_v29 = vsub.f32 %v3848_v57, %v5259_v26  ;;  %v5264_v17 = vand.u32 4294901760, %v3733_v27  ;;  %v3914_v26 = vld [vmem:[#allocation7 + $0xf0] sm:$0xff]  ;;  %v5270_v45 = vand.u32 4294901760, %v3882_v33 }
  0xa6   :  { %v3905_v8 = vsub.f32 %v3853_v16, %v5261_v60  ;;  %v2629_v2 = vpack.c.bf16 %v1325_v25, %v1313_v21  ;;  %v1330_v31 = vsub.f32 %v3873_v48, %v5266_v23  ;;  %v5267_v60 = vand.u32 4294901760, %v3865_v0 }
  0xa7   :  { %5257 = vst [vmem:[#allocation59_spill] sm:$0xff] %v3889_v61  ;;  %5260 = vst [vmem:[#allocation16_spill] sm:$0xff] %v3896_v29  ;;  %v3912_v7 = vpack.c.bf16 %v5264_v17, %v5263_v35  ;;  %v4992_v28 = vand.u32 4294901760, %v3896_v29  ;;  %2458 = vmatpush1.bf16.msra.mxu0 %v5269_v36  ;;  %v1342_v27 = vsub.f32 %v3882_v33, %v5270_v45  ;;  %v5271_v25 = vand.u32 4294901760, %v3876_v42  ;;  %v5273_v17 = vld [vmem:[#allocation18_spill] sm:$0xff] }
  0xa8   :  { %5262 = vst [vmem:[#allocation60_spill] sm:$0xff] %v3905_v8  ;;  %v3923_v50 = vsub.f32 %v3865_v0, %v5267_v60  ;;  %v4995_v23 = vand.u32 4294901760, %v3899_v3  ;;  %2460 = vmatprep.subr.bf16.mxu0 %v5273_v17  ;;  %2630 = vmatpush1.bf16.msra.mxu1 %v2629_v2  ;;  %v1331_v60 = vand.u32 4294901760, %v1330_v31  ;;  %v5007_v45 = vand.u32 4294901760, %v3914_v26  ;;  %v3951_v31 = vld [vmem:[#allocation7 + $0x108] sm:$0xff] }
  0xa9   :  { %5265 = vst [vmem:[#allocation61_spill] sm:$0xff] %v3912_v7  ;;  %v3933_v21 = vsub.f32 %v3876_v42, %v5271_v25  ;;  %v1336_v48 = vsub.f32 %v3896_v29, %v4992_v28  ;;  %v1343_v35 = vand.u32 4294901760, %v1342_v27  ;;  %v5274_v33 = vand.u32 4294901760, %v3905_v8  ;;  %v5280_v29 = vld [vmem:[#allocation19_spill] sm:$0xff] }
  0xaa   :  { %5268 = vst [vmem:[#allocation62_spill] sm:$0xff] %v3923_v50  ;;  %v5004_v13 = vand.u32 4294901760, %v3923_v50  ;;  %v3949_v2 = vsub.f32 %v3899_v3, %v4995_v23  ;;  %v5277_v19 = vand.u32 4294901760, %v3769_v1 }
  0xab   :  { %5272 = vst [vmem:[#allocation17_spill] sm:$0xff] %v3933_v21  ;;  %v1348_v25 = vsub.f32 %v3905_v8, %v5274_v33  ;;  %v1337_v28 = vand.u32 4294901760, %v1336_v48  ;;  %v3961_v33 = vsub.f32 %v3914_v26, %v5007_v45  ;;  %v5278_v8 = vand.u32 4294901760, %v3784_v47  ;;  %2462 = vmatpush1.bf16.msra.mxu0 %v5280_v29  ;;  %v5282_v45 = vld [vmem:[#allocation20_spill] sm:$0xff] }
  0xac   :  { %5275 = vst [vmem:[#allocation18_spill] sm:$0xff] %v3949_v2  ;;  %v1354_v27 = vsub.f32 %v3923_v50, %v5004_v13  ;;  %v2631_v41 = vpack.c.bf16 %v1343_v35, %v1331_v60  ;;  %v5281_v48 = vand.u32 4294901760, %v3933_v21  ;;  %v5013_v13 = vand.u32 4294901760, %v3949_v2  ;;  %v3974_v50 = vld [vmem:[#allocation7 + $0x100] sm:$0xff]  ;;  %2464 = vmatprep.subr.bf16.mxu0 %v5282_v45 }
  0xad   :  { %5276 = vst [vmem:[#allocation63_spill] sm:$0xff] %v3961_v33  ;;  %v3967_v23 = vpack.c.bf16 %v5278_v8, %v5277_v19  ;;  %v1349_v38 = vand.u32 4294901760, %v1348_v25  ;;  %v5012_v1 = vand.u32 4294901760, %v3961_v33  ;;  %v3980_v8 = vld [vmem:[#allocation7 + $0x110] sm:$0xff]  ;;  %v5286_v47 = vand.u32 4294901760, %v3951_v31 }
  0xae   :  { %v1366_v55 = vsub.f32 %v3933_v21, %v5281_v48  ;;  %v1355_v40 = vand.u32 4294901760, %v1354_v27  ;;  %2632 = vmatprep.subr.bf16.mxu1 %v2631_v41  ;;  %v1360_v25 = vsub.f32 %v3949_v2, %v5013_v13  ;;  %v5283_v48 = vand.u32 4294901760, %v3823_v34  ;;  %v4005_v34 = vld [vmem:[#allocation7 + $0x128] sm:$0xff] }
  0xaf   :  { %5279 = vst [vmem:[#allocation64_spill] sm:$0xff] %v3967_v23  ;;  %v2633_v35 = vpack.c.bf16 %v1349_v38, %v1337_v28  ;;  %v5284_v21 = vand.u32 4294901760, %v3837_v58  ;;  %v1372_v19 = vsub.f32 %v3961_v33, %v5012_v1  ;;  %v3997_v41 = vsub.f32 %v3951_v31, %v5286_v47  ;;  %v4007_v58 = vld [vmem:[#allocation7 + $0x138] sm:$0xff] }
  0xb0   :  { %v1367_v60 = vand.u32 4294901760, %v1366_v55  ;;  %v5288_v55 = vand.u32 4294901760, %v3953_v18  ;;  %v1361_v1 = vand.u32 4294901760, %v1360_v25  ;;  %v5021_v13 = vand.u32 4294901760, %v3980_v8 }
  0xb1   :  { %v3989_v27 = vpack.c.bf16 %v5284_v21, %v5283_v48  ;;  %5287 = vst [vmem:[#allocation20_spill] sm:$0xff] %v3997_v41  ;;  %v5290_v21 = vld [vmem:[#allocation21_spill] sm:$0xff]  ;;  %2634 = vmatpush1.bf16.msra.mxu1 %v2633_v35  ;;  %v5291_v47 = vand.u32 4294901760, %v3848_v57  ;;  %v5292_v33 = vand.u32 4294901760, %v3853_v16  ;;  %v1373_v28 = vand.u32 4294901760, %v1372_v19  ;;  %v4025_v35 = vld [vmem:[#allocation7 + $0x120] sm:$0xff] }
  0xb2   :  { %v4002_v38 = vsub.f32 %v3953_v18, %v5288_v55  ;;  %2466 = vmatpush1.bf16.msra.mxu0 %v5290_v21  ;;  %v2635_v48 = vpack.c.bf16 %v1367_v60, %v1355_v40  ;;  %v5294_v55 = vld [vmem:[#allocation22_spill] sm:$0xff]  ;;  %v5295_v7 = vand.u32 4294901760, %v3974_v50  ;;  %v4030_v57 = vsub.f32 %v3980_v8, %v5021_v13 }
  0xb3   :  { %5285 = vst [vmem:[#allocation19_spill] sm:$0xff] %v3989_v27  ;;  %v4015_v2 = vpack.c.bf16 %v5292_v33, %v5291_v47  ;;  %2468 = vmatprep.subr.bf16.mxu0 %v5294_v55  ;;  %v5022_v27 = vand.u32 4294901760, %v3997_v41  ;;  %v5298_v19 = vand.u32 4294901760, %v3865_v0  ;;  %v5299_v60 = vand.u32 4294901760, %v3876_v42  ;;  %v5301_v33 = vld [vmem:[#allocation23_spill] sm:$0xff] }
  0xb4   :  { %5289 = vst [vmem:[#allocation65_spill] sm:$0xff] %v4002_v38  ;;  %v5023_v23 = vand.u32 4294901760, %v4002_v38  ;;  %v4023_v40 = vsub.f32 %v3974_v50, %v5295_v7  ;;  %2636 = vmatprep.subr.bf16.mxu1 %v2635_v48  ;;  %5297 = vst [vmem:[#allocation66_spill] sm:$0xff] %v4030_v57  ;;  %v4040_v7 = vld [vmem:[#allocation7 + $0x130] sm:$0xff]  ;;  %v2637_v47 = vpack.c.bf16 %v1373_v28, %v1361_v1  ;;  %v5302_v42 = vand.u32 4294901760, %v4005_v34 }
  0xb5   :  { %5293 = vst [vmem:[#allocation21_spill] sm:$0xff] %v4015_v2  ;;  %v4038_v25 = vpack.c.bf16 %v5299_v60, %v5298_v19  ;;  %v1378_v48 = vsub.f32 %v3997_v41, %v5022_v27  ;;  %v5304_v1 = vand.u32 4294901760, %v4007_v58  ;;  %v5035_v60 = vand.u32 4294901760, %v4025_v35  ;;  %v5306_v27 = vld [vmem:[#allocation24_spill] sm:$0xff] }
  0xb6   :  { %5296 = vst [vmem:[#allocation22_spill] sm:$0xff] %v4023_v40  ;;  %v1390_v13 = vsub.f32 %v4002_v38, %v5023_v23  ;;  %2470 = vmatpush1.bf16.msra.mxu0 %v5301_v33  ;;  %v4054_v19 = vsub.f32 %v4005_v34, %v5302_v42  ;;  %2638 = vmatpush1.bf16.msra.mxu1 %v2637_v47  ;;  %v5307_v38 = vand.u32 4294901760, %v4023_v40  ;;  %v5038_v41 = vand.u32 4294901760, %v4040_v7 }
  0xb7   :  { %5300 = vst [vmem:[#allocation67_spill] sm:$0xff] %v4038_v25  ;;  %v4059_v28 = vsub.f32 %v4007_v58, %v5304_v1  ;;  %2472 = vmatprep.subr.bf16.mxu0 %v5306_v27  ;;  %v1379_v23 = vand.u32 4294901760, %v1378_v48  ;;  %v5308_v42 = vand.u32 4294901760, %v4030_v57  ;;  %v4075_v47 = vsub.f32 %v4025_v35, %v5035_v60  ;;  %v4079_v48 = vld [vmem:[#allocation7 + $0x158] sm:$0xff] }
  0xb8   :  { %5303 = vst [vmem:[#allocation23_spill] sm:$0xff] %v4054_v19  ;;  %v1391_v16 = vand.u32 4294901760, %v1390_v13  ;;  %v1384_v0 = vsub.f32 %v4023_v40, %v5307_v38  ;;  %v4077_v13 = vld [vmem:[#allocation7 + $0x148] sm:$0xff]  ;;  %v4084_v61 = vsub.f32 %v4040_v7, %v5038_v41  ;;  %v5312_v2 = vand.u32 4294901760, %v3914_v26  ;;  %v4100_v41 = vld [vmem:[#allocation7 + $0x140] sm:$0xff] }
  0xb9   :  { %5305 = vst [vmem:[#allocation68_spill] sm:$0xff] %v4059_v28  ;;  %v1396_v25 = vsub.f32 %v4030_v57, %v5308_v42  ;;  %5309 = vst [vmem:[#allocation24_spill] sm:$0xff] %v4075_v47  ;;  %v5311_v42 = vand.u32 4294901760, %v3899_v3  ;;  %v5314_v57 = vld [vmem:[#allocation27_spill] sm:$0xff]  ;;  %v5315_v15 = vand.u32 4294901760, %v4054_v19  ;;  %v5321_v52 = vand.u32 4294901760, %v4075_v47 }
  0xba   :  { %v2639_v38 = vpack.c.bf16 %v1391_v16, %v1379_v23  ;;  %v1385_v40 = vand.u32 4294901760, %v1384_v0  ;;  %5310 = vst [vmem:[#allocation69_spill] sm:$0xff] %v4084_v61  ;;  %2474 = vmatpush1.bf16.msra.mxu0 %v5314_v57  ;;  %v5316_v23 = vand.u32 4294901760, %v4059_v28  ;;  %v5317_v3 = vld [vmem:[#allocation31_spill] sm:$0xff]  ;;  %v5045_v26 = vand.u32 4294901760, %v4084_v61 }
  0xbb   :  { %v4090_v1 = vpack.c.bf16 %v5312_v2, %v5311_v42  ;;  %v1397_v60 = vand.u32 4294901760, %v1396_v25  ;;  %v1402_v46 = vsub.f32 %v4054_v19, %v5315_v15  ;;  %2476 = vmatprep.subr.bf16.mxu0 %v5317_v3  ;;  %v5318_v42 = vand.u32 4294901760, %v3951_v31 }
  0xbc   :  { %v1414_v16 = vsub.f32 %v4059_v28, %v5316_v23  ;;  %2640 = vmatprep.subr.bf16.mxu1 %v2639_v38  ;;  %v5319_v15 = vand.u32 4294901760, %v3953_v18  ;;  %v4112_v23 = vld [vmem:[#allocation7 + $0x150] sm:$0xff]  ;;  %v1408_v38 = vsub.f32 %v4075_v47, %v5321_v52  ;;  %v1420_v2 = vsub.f32 %v4084_v61, %v5045_v26  ;;  %v5325_v52 = vld [vmem:[#allocation32_spill] sm:$0xff] }
  0xbd   :  { %5313 = vst [vmem:[#allocation70_spill] sm:$0xff] %v4090_v1  ;;  %v2641_v0 = vpack.c.bf16 %v1397_v60, %v1385_v40  ;;  %v1403_v28 = vand.u32 4294901760, %v1402_v46  ;;  %v5322_v25 = vand.u32 4294901760, %v4077_v13  ;;  %v5323_v18 = vand.u32 4294901760, %v4079_v48  ;;  %v4131_v40 = vld [vmem:[#allocation7 + $0x168] sm:$0xff]  ;;  %v4133_v60 = vld [vmem:[#allocation7 + $0x178] sm:$0xff] }
  0xbe   :  { %v4110_v19 = vpack.c.bf16 %v5319_v15, %v5318_v42  ;;  %v1415_v1 = vand.u32 4294901760, %v1414_v16  ;;  %2478 = vmatpush1.bf16.msra.mxu0 %v5325_v52  ;;  %v1409_v15 = vand.u32 4294901760, %v1408_v38  ;;  %v5052_v26 = vand.u32 4294901760, %v4112_v23 }
  0xbf   :  { %v4123_v31 = vsub.f32 %v4077_v13, %v5322_v25  ;;  %v4128_v42 = vsub.f32 %v4079_v48, %v5323_v18  ;;  %2642 = vmatpush1.bf16.msra.mxu1 %v2641_v0  ;;  %v5326_v25 = vand.u32 4294901760, %v3974_v50  ;;  %v5327_v61 = vand.u32 4294901760, %v3980_v8  ;;  %2480 = vmatprep.subr.bf16.mxu0 %v3380_v63 }
  0xc0   :  { %5320 = vst [vmem:[#allocation27_spill] sm:$0xff] %v4110_v19  ;;  %v2643_v16 = vpack.c.bf16 %v1415_v1, %v1403_v28  ;;  %v1421_v18 = vand.u32 4294901760, %v1420_v2  ;;  %v5329_v37 = vand.u32 4294901760, %v4100_v41  ;;  %v4151_v1 = vld [vmem:[#allocation7 + $0x160] sm:$0xff]  ;;  %v4156_v50 = vsub.f32 %v4112_v23, %v5052_v26 }
  0xc1   :  { %5324 = vst [vmem:[#allocation31_spill] sm:$0xff] %v4128_v42  ;;  %v4141_v47 = vpack.c.bf16 %v5327_v61, %v5326_v25  ;;  %v5054_v46 = vand.u32 4294901760, %v4123_v31  ;;  %v5053_v19 = vand.u32 4294901760, %v4128_v42  ;;  %v5057_v63 = vand.u32 4294901760, %v4131_v40 }
  0xc2   :  { %v4149_v28 = vsub.f32 %v4100_v41, %v5329_v37  ;;  %2644 = vmatprep.subr.bf16.mxu1 %v2643_v16  ;;  %5331 = vst [vmem:[#allocation72_spill] sm:$0xff] %v4156_v50  ;;  %v5055_v61 = vand.u32 4294901760, %v4133_v60  ;;  %v5332_v8 = vand.u32 4294901760, %v4005_v34  ;;  %v5333_v0 = vand.u32 4294901760, %v4007_v58  ;;  %v4166_v37 = vld [vmem:[#allocation7 + $0x170] sm:$0xff] }
  0xc3   :  { %5328 = vst [vmem:[#allocation32_spill] sm:$0xff] %v4141_v47  ;;  %v5335_v38 = vand.u32 4294901760, %v5242_v30  ;;  %v2645_v16 = vpack.c.bf16 %v1421_v18, %v1409_v15  ;;  %v1426_v25 = vsub.f32 %v4123_v31, %v5054_v46  ;;  %v1438_v26 = vsub.f32 %v4128_v42, %v5053_v19 }
  0xc4   :  { %5330 = vst [vmem:[#allocation71_spill] sm:$0xff] %v4149_v28  ;;  %v4164_v2 = vpack.c.bf16 %v5333_v0, %v5332_v8  ;;  %v5056_v34 = vand.u32 4294901760, %v4149_v28  ;;  %v5058_v58 = vand.u32 4294901760, %v4156_v50  ;;  %v4183_v30 = vsub.f32 %v4131_v40, %v5057_v63 }
  0xc5   :  { %682 = vmatmul.mubr.f32.vlgmr.msra.gmra.mrb[0].mxu0 %v5335_v38  ;;  %v4188_v15 = vsub.f32 %v4133_v60, %v5055_v61  ;;  %v5059_v18 = vand.u32 4294901760, %v4151_v1  ;;  %2646 = vmatpush1.bf16.msra.mxu1 %v2645_v16  ;;  %v1439_v8 = vand.u32 4294901760, %v1438_v26  ;;  %v5064_v38 = vand.u32 4294901760, %v4166_v37  ;;  %v4206_v26 = vld [vmem:[#allocation7 + $0x188] sm:$0xff]  ;;  %v4208_v16 = vld [vmem:[#allocation7 + $0x198] sm:$0xff] }
  0xc6   :  { %5334 = vst [vmem:[#allocation73_spill] sm:$0xff] %v4164_v2  ;;  %2482 = vmatpush1.bf16.msra.mxu0 %v3386_v9  ;;  %848 = vmatprep.mubr.f32.mxu0 %v5192_v54  ;;  %v1427_v9 = vand.u32 4294901760, %v1426_v25  ;;  %v1432_v0 = vsub.f32 %v4149_v28, %v5056_v34  ;;  %v1444_v19 = vsub.f32 %v4156_v50, %v5058_v58  ;;  %v5339_v58 = vand.u32 4294901760, %v4025_v35 }
  0xc7   :  { %5336 = vst [vmem:[#allocation74_spill] sm:$0xff] %v4188_v15  ;;  %2484 = vmatprep.subr.bf16.mxu0 %v3392_v49  ;;  %v4204_v49 = vsub.f32 %v4151_v1, %v5059_v18  ;;  %v4213_v63 = vsub.f32 %v4166_v37, %v5064_v38  ;;  %v5340_v61 = vand.u32 4294901760, %v4040_v7  ;;  %v5342_v50 = vand.u32 4294901760, %v4183_v30  ;;  %v4229_v38 = vld [vmem:[#allocation7 + $0x180] sm:$0xff] }
  0xc8   :  { %v2647_v25 = vpack.c.bf16 %v1439_v8, %v1427_v9  ;;  %v1433_v34 = vand.u32 4294901760, %v1432_v0  ;;  %v1445_v18 = vand.u32 4294901760, %v1444_v19  ;;  %v5343_v9 = vand.u32 4294901760, %v4188_v15 }
  0xc9   :  { %5337 = vst [vmem:[#allocation75_spill] sm:$0xff] %v4204_v49  ;;  %5338 = vst [vmem:[#allocation76_spill] sm:$0xff] %v4213_v63  ;;  %v4219_v46 = vpack.c.bf16 %v5340_v61, %v5339_v58  ;;  %v1450_v28 = vsub.f32 %v4183_v30, %v5342_v50  ;;  %v5067_v35 = vand.u32 4294901760, %v4213_v63  ;;  %v5344_v19 = vand.u32 4294901760, %v4077_v13  ;;  %v4241_v58 = vld [vmem:[#allocation7 + $0x190] sm:$0xff] }
  0xca   :  { %2486 = vmatpush1.bf16.msra.mxu0 %v3398_v43  ;;  %v1462_v8 = vsub.f32 %v4188_v15, %v5343_v9  ;;  %2648 = vmatprep.subr.bf16.mxu1 %v2647_v25  ;;  %v5345_v50 = vand.u32 4294901760, %v4079_v48  ;;  %v2649_v9 = vpack.c.bf16 %v1445_v18, %v1433_v34  ;;  %v5348_v7 = vand.u32 4294901760, %v4206_v26  ;;  %v4260_v34 = vld [vmem:[#allocation7 + $0x1a8] sm:$0xff]  ;;  %v4262_v18 = vld [vmem:[#allocation7 + $0x1b8] sm:$0xff] }
  0xcb   :  { %5341 = vst [vmem:[#allocation77_spill] sm:$0xff] %v4219_v46  ;;  %2488 = vmatprep.subr.bf16.mxu0 %v3404_v11  ;;  %v1451_v0 = vand.u32 4294901760, %v1450_v28  ;;  %v5347_v11 = vand.u32 4294901760, %v4204_v49  ;;  %v1468_v43 = vsub.f32 %v4213_v63, %v5067_v35  ;;  %v5349_v48 = vand.u32 4294901760, %v4208_v16 }
  0xcc   :  { %v4239_v61 = vpack.c.bf16 %v5345_v50, %v5344_v19  ;;  %v1463_v15 = vand.u32 4294901760, %v1462_v8  ;;  %v4252_v13 = vsub.f32 %v4206_v26, %v5348_v7  ;;  %2650 = vmatpush1.bf16.msra.mxu1 %v2649_v9  ;;  %v5351_v7 = vand.u32 4294901760, %v4100_v41 }
  0xcd   :  { %v1456_v25 = vsub.f32 %v4204_v49, %v5347_v11  ;;  %v4257_v19 = vsub.f32 %v4208_v16, %v5349_v48  ;;  %v5072_v11 = vand.u32 4294901760, %v4241_v58  ;;  %v5352_v35 = vand.u32 4294901760, %v4112_v23 }
  0xce   :  { %5346 = vst [vmem:[#allocation78_spill] sm:$0xff] %v4239_v61  ;;  %2490 = vmatpush1.bf16.msra.mxu0 %v3410_v14  ;;  %v2651_v8 = vpack.c.bf16 %v1463_v15, %v1451_v0  ;;  %v1469_v48 = vand.u32 4294901760, %v1468_v43  ;;  %v5074_v28 = vand.u32 4294901760, %v4252_v13  ;;  %v5354_v14 = vand.u32 4294901760, %v4229_v38  ;;  %v4280_v0 = vld [vmem:[#allocation7 + $0x1a0] sm:$0xff] }
  0xcf   :  { %5350 = vst [vmem:[#allocation79_spill] sm:$0xff] %v4257_v19  ;;  %v1457_v50 = vand.u32 4294901760, %v1456_v25  ;;  %v4270_v63 = vpack.c.bf16 %v5352_v35, %v5351_v7  ;;  %2492 = vmatprep.subr.bf16.mxu0 %v3416_v56  ;;  %v5073_v49 = vand.u32 4294901760, %v4257_v19  ;;  %v4285_v41 = vsub.f32 %v4241_v58, %v5072_v11  ;;  %v4295_v25 = vld [vmem:[#allocation7 + $0x1b0] sm:$0xff] }
  0xd0   :  { %v4278_v15 = vsub.f32 %v4229_v38, %v5354_v14  ;;  %2652 = vmatprep.subr.bf16.mxu1 %v2651_v8  ;;  %v5075_v56 = vand.u32 4294901760, %v4260_v34  ;;  %v5076_v23 = vand.u32 4294901760, %v4262_v18  ;;  %v5357_v35 = vand.u32 4294901760, %v4131_v40 }
  0xd1   :  { %5353 = vst [vmem:[#allocation80_spill] sm:$0xff] %v4270_v63  ;;  %5356 = vst [vmem:[#allocation82_spill] sm:$0xff] %v4285_v41  ;;  %v5358_v43 = vand.u32 4294901760, %v4133_v60  ;;  %v2653_v7 = vpack.c.bf16 %v1469_v48, %v1457_v50  ;;  %v1474_v8 = vsub.f32 %v4252_v13, %v5074_v28  ;;  %v1486_v14 = vsub.f32 %v4257_v19, %v5073_v49 }
  0xd2   :  { %5355 = vst [vmem:[#allocation81_spill] sm:$0xff] %v4278_v15  ;;  %v5079_v11 = vand.u32 4294901760, %v4278_v15  ;;  %2494 = vmatpush1.bf16.msra.mxu0 %v3422_v53  ;;  %v5080_v40 = vand.u32 4294901760, %v4285_v41  ;;  %v4309_v60 = vsub.f32 %v4260_v34, %v5075_v56  ;;  %v4314_v50 = vsub.f32 %v4262_v18, %v5076_v23  ;;  %v5364_v23 = vld [vmem:[#allocation34_spill] sm:$0xff] }
  0xd3   :  { %v4293_v9 = vpack.c.bf16 %v5358_v43, %v5357_v35  ;;  %v5085_v48 = vand.u32 4294901760, %v4280_v0  ;;  %v5360_v35 = vld [vmem:[#allocation33_spill] sm:$0xff]  ;;  %2654 = vmatpush1.bf16.msra.mxu1 %v2653_v7  ;;  %v1475_v43 = vand.u32 4294901760, %v1474_v8  ;;  %v1487_v49 = vand.u32 4294901760, %v1486_v14 }
  0xd4   :  { %2496 = vmatprep.subr.bf16.mxu0 %v5360_v35  ;;  %v1480_v53 = vsub.f32 %v4278_v15, %v5079_v11  ;;  %v5089_v28 = vand.u32 4294901760, %v4295_v25  ;;  %v1492_v56 = vsub.f32 %v4285_v41, %v5080_v40  ;;  %v5361_v11 = vand.u32 4294901760, %v4151_v1 }
  0xd5   :  { %5359 = vst [vmem:[#allocation83_spill] sm:$0xff] %v4293_v9  ;;  %v4330_v7 = vsub.f32 %v4280_v0, %v5085_v48  ;;  %v2655_v8 = vpack.c.bf16 %v1487_v49, %v1475_v43  ;;  %v5362_v40 = vand.u32 4294901760, %v4166_v37  ;;  %v5365_v15 = vand.u32 4294901760, %v4309_v60 }
  0xd6   :  { %v1481_v14 = vand.u32 4294901760, %v1480_v53  ;;  %v4335_v35 = vsub.f32 %v4295_v25, %v5089_v28  ;;  %2498 = vmatpush1.bf16.msra.mxu0 %v5364_v23  ;;  %v1493_v19 = vand.u32 4294901760, %v1492_v56  ;;  %v5366_v49 = vand.u32 4294901760, %v4314_v50 }
  0xd7   :  { %v4341_v41 = vpack.c.bf16 %v5362_v40, %v5361_v11  ;;  %v1498_v48 = vsub.f32 %v4309_v60, %v5365_v15  ;;  %v5087_v53 = vand.u32 4294901760, %v4330_v7  ;;  %2500 = vmatprep.subr.bf16.mxu0 %v3440_v4  ;;  %2656 = vmatprep.subr.bf16.mxu1 %v2655_v8  ;;  %v5368_v8 = vld [vmem:[#allocation36_spill] sm:$0xff] }
  0xd8   :  { %v1510_v43 = vsub.f32 %v4314_v50, %v5366_v49  ;;  %v5086_v1 = vand.u32 4294901760, %v4335_v35  ;;  %v2657_v37 = vpack.c.bf16 %v1493_v19, %v1481_v14  ;;  %v5369_v14 = vld [vmem:[#allocation25_spill] sm:$0xff] }
  0xd9   :  { %5363 = vst [vmem:[#allocation33_spill] sm:$0xff] %v4341_v41  ;;  %v1499_v11 = vand.u32 4294901760, %v1498_v48  ;;  %v1504_v56 = vsub.f32 %v4330_v7, %v5087_v53  ;;  %v5367_v48 = vld [vmem:[#allocation35_spill] sm:$0xff] }
  0xda   :  { %v1511_v40 = vand.u32 4294901760, %v1510_v43  ;;  %v1516_v15 = vsub.f32 %v4335_v35, %v5086_v1  ;;  %2502 = vmatpush1.bf16.msra.mxu0 %v3446_v6  ;;  %2658 = vmatpush1.bf16.msra.mxu1 %v2657_v37  ;;  %v5370_v6 = vld [vmem:[#allocation52_spill] sm:$0xff] }
  0xdb   :  { %v1505_v49 = vand.u32 4294901760, %v1504_v56  ;;  %2504 = vmatprep.subr.bf16.mxu0 %v3450_v20  ;;  %v5371_v20 = vld [vmem:[#allocation55_spill] sm:$0xff]  ;;  %v1023_v56 = vld [vmem:[#allocation7 + $0x1e8] sm:$0xff] }
  0xdc   :  { %v2659_v23 = vpack.c.bf16 %v1511_v40, %v1499_v11  ;;  %v1517_v4 = vand.u32 4294901760, %v1516_v15  ;;  %v1025_v15 = vld [vmem:[#allocation7 + $0x1f8] sm:$0xff] }
  0xde   :  { %2660 = vmatprep.subr.bf16.mxu1 %v2659_v23  ;;  %v2661_v19 = vpack.c.bf16 %v1517_v4, %v1505_v49  ;;  %2506 = vmatpush1.bf16.msra.mxu0 %v3452_v22  ;;  %v5372_v22 = vld [vmem:[#allocation13_spill] sm:$0xff]  ;;  %v1158_v4 = vand.u32 4294901760, %v1023_v56 }
  0xdf   :  { %2508 = vmatprep.subr.bf16.mxu0 %v5367_v48  ;;  %v1022_v48 = vld [vmem:[#allocation7 + $0x1e0] sm:$0xff] }
  0xe0   :  { %2662 = vmatpush1.bf16.msra.mxu1 %v2661_v19  ;;  %v1162_v19 = vand.u32 4294901760, %v1025_v15  ;;  %v1160_v1 = vand.u32 4294901760, %v1022_v48 }
  0xe2   :  { %2510 = vmatpush1.bf16.msra.mxu0 %v5368_v8  ;;  %v1024_v8 = vld [vmem:[#allocation7 + $0x1f0] sm:$0xff]  ;;  %v4445_v28 = vsub.f32 %v1025_v15, %v1162_v19 }
  0xe3   :  { %2512 = vmatprep.subr.bf16.mxu0 %v5240_v44  ;;  %v5377_v44 = vld [vmem:[#allocation19_spill] sm:$0xff] }
  0xe5   :  { %850 = vmatmul.mubr.f32.vlgmr.msra.gmra.mrb[0].mxu0 %v5369_v14 }
  0xe6   :  { %2514 = vmatpush1.bf16.msra.mxu0 %v5244_v24  ;;  %952 = vmatprep.mubr.f32.mxu0 %v5192_v54  ;;  %v5373_v54 = vld [vmem:[#allocation14_spill] sm:$0xff]  ;;  %v5376_v24 = vld [vmem:[#allocation64_spill] sm:$0xff] }
  0xe7   :  { %2516 = vmatprep.subr.bf16.mxu0 %v5248_v12  ;;  %v5375_v12 = vld [vmem:[#allocation61_spill] sm:$0xff] }
  0xea   :  { %2518 = vmatpush1.bf16.msra.mxu0 %v5253_v32  ;;  %v5379_v32 = vld [vmem:[#allocation67_spill] sm:$0xff] }
  0xeb   :  { %2520 = vmatprep.subr.bf16.mxu0 %v5258_v10  ;;  %v5374_v10 = vld [vmem:[#allocation59_spill] sm:$0xff] }
  0xee   :  { %2522 = vmatpush1.bf16.msra.mxu0 %v5269_v36  ;;  %v5380_v36 = vld [vmem:[#allocation70_spill] sm:$0xff] }
  0xef   :  { %2524 = vmatprep.subr.bf16.mxu0 %v5273_v17  ;;  %v5381_v17 = vld [vmem:[#allocation27_spill] sm:$0xff] }
  0xf2   :  { %2526 = vmatpush1.bf16.msra.mxu0 %v5280_v29  ;;  %v5378_v29 = vld [vmem:[#allocation21_spill] sm:$0xff] }
  0xf3   :  { %2528 = vmatprep.subr.bf16.mxu0 %v5282_v45  ;;  %v4407_v45 = vld [vmem:[#allocation7 + $0x1c8] sm:$0xff] }
  0xf6   :  { %2530 = vmatpush1.bf16.msra.mxu0 %v5290_v21  ;;  %v5088_v21 = vand.u32 4294901760, %v4407_v45 }
  0xf7   :  { %2532 = vmatprep.subr.bf16.mxu0 %v5294_v55 }
  0xf8   :  { %v4422_v43 = vsub.f32 %v4407_v45, %v5088_v21  ;;  %v4443_v21 = vsub.f32 %v1023_v56, %v1158_v4  ;;  %v5108_v56 = vand.u32 4294901760, %v4445_v28 }
  0xfa   :  { %2534 = vmatpush1.bf16.msra.mxu0 %v5301_v33  ;;  %v4415_v33 = vld [vmem:[#allocation7 + $0x1d0] sm:$0xff]  ;;  %v5098_v23 = vand.u32 4294901760, %v4422_v43 }
  0xfb   :  { %2536 = vmatprep.subr.bf16.mxu0 %v5306_v27  ;;  %v4409_v27 = vld [vmem:[#allocation7 + $0x1d8] sm:$0xff] }
  0xfc   :  { %v1154_v55 = vand.u32 4294901760, %v4409_v27 }
  0xfe   :  { %2538 = vmatpush1.bf16.msra.mxu0 %v5314_v57  ;;  %v4413_v57 = vld [vmem:[#allocation7 + $0x1c0] sm:$0xff]  ;;  %v4425_v37 = vsub.f32 %v4409_v27, %v1154_v55 }
  0xff   :  { %2540 = vmatprep.subr.bf16.mxu0 %v5317_v3  ;;  %v1152_v3 = vand.u32 4294901760, %v4413_v57 }
 0x100   :  { %v5101_v49 = vand.u32 4294901760, %v4425_v37 }
 0x101   :  { %v4428_v11 = vsub.f32 %v4413_v57, %v1152_v3  ;;  %v1164_v57 = vand.u32 4294901760, %v1024_v8 }
 0x102   :  { %2542 = vmatpush1.bf16.msra.mxu0 %v5325_v52  ;;  %v1156_v52 = vand.u32 4294901760, %v4415_v33  ;;  %v1534_v53 = vsub.f32 %v4425_v37, %v5101_v49  ;;  %v5109_v49 = vand.u32 4294901760, %v4443_v21 }
 0x103   :  { %2544 = vmatprep.subr.bf16.mxu0 %v3598_v5 }
 0x104   :  { %v4431_v40 = vsub.f32 %v4415_v33, %v1156_v52  ;;  %v1522_v33 = vsub.f32 %v4422_v43, %v5098_v23 }
 0x105   :  { %954 = vmatmul.mubr.f32.vlgmr.msra.gmra.mrb[0].mxu0 %v5369_v14  ;;  %v5106_v14 = vand.u32 4294901760, %v4428_v11 }
 0x106   :  { %2546 = vmatpush1.bf16.msra.mxu0 %v3624_v62  ;;  %v5107_v27 = vand.u32 4294901760, %v4431_v40  ;;  %v1523_v23 = vand.u32 4294901760, %v1522_v33  ;;  %v5383_v33 = vand.u32 4294901760, %v4208_v16 }
 0x107   :  { %2548 = vmatprep.subr.bf16.mxu0 %v3656_v59 }
 0x10a   :  { %2550 = vmatpush1.bf16.msra.mxu0 %v3710_v39 }
 0x10b   :  { %2552 = vmatprep.subr.bf16.mxu0 %v3729_v51 }
 0x10e   :  { %2554 = vmatpush1.bf16.msra.mxu0 %v5370_v6 }
 0x10f   :  { %2556 = vmatprep.subr.bf16.mxu0 %v5371_v20 }
 0x112   :  { %2558 = vmatpush1.bf16.msra.mxu0 %v5372_v22 }
 0x113   :  { %2560 = vmatprep.subr.bf16.mxu0 %v5373_v54 }
 0x116   :  { %2562 = vmatpush1.bf16.msra.mxu0 %v5374_v10 }
 0x117   :  { %2564 = vmatprep.subr.bf16.mxu0 %v5375_v12 }
 0x11a   :  { %2566 = vmatpush1.bf16.msra.mxu0 %v5376_v24 }
 0x11b   :  { %2568 = vmatprep.subr.bf16.mxu0 %v5377_v44 }
 0x11e   :  { %2570 = vmatpush1.bf16.msra.mxu0 %v5378_v29 }
 0x11f   :  { %2572 = vmatprep.subr.bf16.mxu0 %v5379_v32 }
 0x122   :  { %2574 = vmatpush1.bf16.msra.mxu0 %v5380_v36 }
 0x123   :  { %2576 = vmatprep.subr.bf16.mxu0 %v5381_v17 }
 0x126   :  { %2578 = vmatpush1.bf16.msra.mxu0 %v4141_v47 }
 0x127   :  { %2580 = vmatprep.subr.bf16.mxu0 %v4164_v2 }
 0x12a   :  { %2582 = vmatpush1.bf16.msra.mxu0 %v4219_v46  ;;  %v1535_v46 = vand.u32 4294901760, %v1534_v53  ;;  %v5382_v53 = vand.u32 4294901760, %v4206_v26 }
 0x12b   :  { %2584 = vmatprep.subr.bf16.mxu0 %v4239_v61  ;;  %v4455_v61 = vsub.f32 %v1024_v8, %v1164_v57  ;;  %v1558_v8 = vsub.f32 %v4445_v28, %v5108_v56  ;;  %v5386_v56 = vand.u32 4294901760, %v4241_v58  ;;  %v5391_v58 = vand.u32 4294901760, %v4280_v0 }
 0x12c   :  { %v2663_v17 = vpack.c.bf16 %v1535_v46, %v1523_v23  ;;  %v5385_v23 = vand.u32 4294901760, %v4229_v38  ;;  %v4508_v0 = vpack.c.bf16 %v1156_v52, %v1152_v3 }
 0x12d   :  { %v1559_v16 = vand.u32 4294901760, %v1558_v8  ;;  %v5394_v8 = vld [vmem:[#allocation26_spill] sm:$0xff] }
 0x12e   :  { %2586 = vmatpush1.bf16.msra.mxu0 %v4270_v63  ;;  %v4453_v63 = vsub.f32 %v1022_v48, %v1160_v1  ;;  %v1546_v48 = vsub.f32 %v4443_v21, %v5109_v49  ;;  %2664 = vmatprep.subr.bf16.mxu1 %v2663_v17  ;;  %v4483_v49 = vpack.c.bf16 %v5386_v56, %v5385_v23  ;;  %v5389_v17 = vand.u32 4294901760, %v4262_v18 }
 0x12f   :  { %2588 = vmatprep.subr.bf16.mxu0 %v4293_v9  ;;  %v1540_v9 = vsub.f32 %v4431_v40, %v5107_v27  ;;  %v4471_v27 = vpack.c.bf16 %v5383_v33, %v5382_v53  ;;  %v5388_v33 = vand.u32 4294901760, %v4260_v34  ;;  %v5392_v56 = vand.u32 4294901760, %v4295_v25  ;;  %5398 = vst [vmem:[#allocation55_spill] sm:$0xff] %v4508_v0 }
 0x130   :  { %v5113_v47 = vand.u32 4294901760, %v4453_v63  ;;  %5387 = vst [vmem:[#allocation35_spill] sm:$0xff] %v4483_v49  ;;  %v1547_v26 = vand.u32 4294901760, %v1546_v48  ;;  %v5396_v18 = vand.u32 4294901760, %v4407_v45  ;;  %v4511_v25 = vpack.c.bf16 %v1162_v19, %v1158_v4 }
 0x131   :  { %v1541_v2 = vand.u32 4294901760, %v1540_v9  ;;  %5384 = vst [vmem:[#allocation34_spill] sm:$0xff] %v4471_v27  ;;  %v4497_v48 = vpack.c.bf16 %v5392_v56, %v5391_v58  ;;  %v95_v23 = vlaneseq }
 0x132   :  { %2590 = vmatpush1.bf16.msra.mxu0 %v4341_v41  ;;  %v1528_v41 = vsub.f32 %v4428_v11, %v5106_v14  ;;  %v5110_v14 = vand.u32 4294901760, %v4455_v61  ;;  %v1552_v9 = vsub.f32 %v4453_v63, %v5113_v47  ;;  %v2667_v53 = vpack.c.bf16 %v1559_v16, %v1547_v26  ;;  %5399 = vst [vmem:[#allocation13_spill] sm:$0xff] %v4511_v25  ;;  %v5412_v47 = vld [vmem:[#allocation44_spill] sm:$0xff] }
 0x133   :  { %2592 = vmatprep.subr.bf16.mxu0 %v4471_v27  ;;  %5393 = vst [vmem:[#allocation25_spill] sm:$0xff] %v4497_v48  ;;  %v4517_v26 = vshrl.u32 %v95_v23, 7 }
 0x134   :  { %v1529_v15 = vand.u32 4294901760, %v1528_v41  ;;  %v1564_v46 = vsub.f32 %v4455_v61, %v5110_v14  ;;  %v4491_v14 = vpack.c.bf16 %v5389_v17, %v5388_v33  ;;  %v5404_v17 = vld [vmem:[#allocation29_spill] sm:$0xff] }
 0x135   :  { %5401 = vst [vmem:[#allocation59_spill] sm:$0xff] %v4517_v26  ;;  %v5112_v45 = vsub.s32 0, %v4517_v26  ;;  %v5111_v3 = vsub.s32 1, %v4517_v26  ;;  %v5413_v26 = vld [vmem:[#allocation45_spill] sm:$0xff] }
 0x136   :  { %v2665_v41 = vpack.c.bf16 %v1541_v2, %v1529_v15  ;;  %v1553_v2 = vand.u32 4294901760, %v1552_v9  ;;  %v1565_v15 = vand.u32 4294901760, %v1564_v46  ;;  %2594 = vmatpush1.bf16.msra.mxu0 %v4483_v49  ;;  %5390 = vst [vmem:[#allocation36_spill] sm:$0xff] %v4491_v14  ;;  %v4505_v9 = vpack.c.bf16 %v1154_v55, %v5396_v18  ;;  %v93_v55 = vld [vmem:[%s4833_s2] sm:$0x3] }
 0x137   :  { %2596 = vmatprep.subr.bf16.mxu0 %v4491_v14  ;;  %v4514_v46 = vpack.c.bf16 %v1164_v57, %v1160_v1  ;;  %v98_v52 = vrot.slane %v93_v55, %v5112_v45  ;;  %v102_v1 = vrot.slane %v93_v55, %v5111_v3  ;;  %v5407_v18 = vld [vmem:[#allocation39_spill] sm:$0xff] }
 0x138   :  { %2666 = vmatpush1.bf16.msra.mxu1 %v2665_v41  ;;  %v2669_v38 = vpack.c.bf16 %v1565_v15, %v1553_v2  ;;  %v5395_v41 = vld [vmem:[#allocation28_spill] sm:$0xff]  ;;  %5397 = vst [vmem:[#allocation52_spill] sm:$0xff] %v4505_v9 }
 0x139   :  { %2668 = vmatprep.subr.bf16.mxu1 %v2667_v53  ;;  %v2671_v34 = vpack.c.bf16 %v5395_v41, %v5394_v8  ;;  %5400 = vst [vmem:[#allocation14_spill] sm:$0xff] %v4514_v46 }
 0x13a   :  { %2598 = vmatpush1.bf16.msra.mxu0 %v4497_v48 }
 0x13b   :  { %2600 = vmatprep.subr.bf16.mxu0 %v4505_v9 }
 0x13c   :  { %2670 = vmatpush1.bf16.msra.mxu1 %v2669_v38  ;;  %v5405_v38 = vld [vmem:[#allocation37_spill] sm:$0xff] }
 0x13d   :  { %2672 = vmatprep.subr.bf16.mxu1 %v2671_v34  ;;  %v2673_v58 = vpack.c.bf16 %v5405_v38, %v5404_v17  ;;  %v5406_v34 = vld [vmem:[#allocation38_spill] sm:$0xff] }
 0x13e   :  { %2602 = vmatpush1.bf16.msra.mxu0 %v4508_v0  ;;  %v2675_v23 = vpack.c.bf16 %v5407_v18, %v5406_v34  ;;  %v5419_v34 = vld [vmem:[#allocation51_spill] sm:$0xff] }
 0x13f   :  { %2604 = vmatprep.subr.bf16.mxu0 %v4511_v25 }
 0x142   :  { %2606 = vmatpush1.bf16.msra.mxu0 %v4514_v46 }
 0x1d8   :  { %v955_v4 = vpop.f32.mrb[0].mxu0 }
 0x1d9   :  { %v2927_v19 = vadd.f32 %v955_v4, %v98_v52  ;;  %v957_v57 = vpop.f32.mrb[1].mxu0  ;;  %v5409_v4 = vld [vmem:[#allocation41_spill] sm:$0xff] }
 0x1da   :  { %v2928_v16 = vadd.f32 %v957_v57, %v102_v1  ;;  %v5408_v1 = vld [vmem:[#allocation40_spill] sm:$0xff] }
 0x1db   :  { %v960_v2 = vmax.f32 %v2927_v19, 0.0  ;;  %v2677_v19 = vpack.c.bf16 %v5409_v4, %v5408_v1  ;;  %v5414_v1 = vld [vmem:[#allocation46_spill] sm:$0xff] }
 0x1dc   :  { %v961_v15 = vmax.f32 %v2928_v16, 0.0 }
 0x1dd   :  { %v4528_v53 = vand.u32 4294901760, %v960_v2 }
 0x1de   :  { %v4530_v33 = vand.u32 4294901760, %v961_v15 }
 0x1df   :  { %5402 = vst [vmem:[#allocation61_spill] sm:$0xff] %v4528_v53  ;;  %v4535_v56 = vsub.f32 %v960_v2, %v4528_v53  ;;  %v5410_v2 = vld [vmem:[#allocation42_spill] sm:$0xff] }
 0x1e0   :  { %5403 = vst [vmem:[#allocation64_spill] sm:$0xff] %v4530_v33  ;;  %v4540_v55 = vsub.f32 %v961_v15, %v4530_v33  ;;  %1568 = vmatprep.mubr.f32.mxu1 %v4530_v33  ;;  %v5411_v15 = vld [vmem:[#allocation43_spill] sm:$0xff] }
 0x1e1   :  { %v5120_v52 = vand.u32 4294901760, %v4535_v56  ;;  %1570 = vmatmul.mubr.f32.vlgmr.msra.gmra.mrb[0].mxu1 %v4528_v53  ;;  %v2679_v3 = vpack.c.bf16 %v5411_v15, %v5410_v2  ;;  %v2681_v53 = vpack.c.bf16 %v5413_v26, %v5412_v47  ;;  %v5415_v33 = vld [vmem:[#allocation47_spill] sm:$0xff]  ;;  %v5418_v2 = vld [vmem:[#allocation50_spill] sm:$0xff] }
 0x1e2   :  { %2674 = vmatpush1.bf16.msra.mxu1 %v2673_v58  ;;  %1770 = vmatprep.mubr.f32.mxu1 %v4540_v55  ;;  %v5121_v57 = vand.u32 4294901760, %v4540_v55  ;;  %v2683_v18 = vpack.c.bf16 %v5415_v33, %v5414_v1  ;;  %v5424_v33 = vld [vmem:[#allocation12_spill] sm:$0xff]  ;;  %v5427_v1 = vld [vmem:[#allocation15_spill] sm:$0xff] }
 0x1e3   :  { %v1175_v16 = vsub.f32 %v4535_v56, %v5120_v52  ;;  %2676 = vmatprep.subr.bf16.mxu1 %v2675_v23  ;;  %v5416_v23 = vld [vmem:[#allocation48_spill] sm:$0xff]  ;;  %v5417_v52 = vld [vmem:[#allocation49_spill] sm:$0xff] }
 0x1e4   :  { %v1169_v45 = vsub.f32 %v4540_v55, %v5121_v57  ;;  %v2685_v15 = vpack.c.bf16 %v5417_v52, %v5416_v23  ;;  %v2687_v57 = vpack.c.bf16 %v5419_v34, %v5418_v2  ;;  %v5429_v23 = vld [vmem:[#allocation60_spill] sm:$0xff]  ;;  %v5431_v2 = vld [vmem:[#allocation17_spill] sm:$0xff] }
 0x1e5   :  { %v1176_v4 = vand.u32 4294901760, %v1175_v16  ;;  %v5423_v16 = vld [vmem:[#allocation57_spill] sm:$0xff] }
 0x1e6   :  { %2678 = vmatpush1.bf16.msra.mxu1 %v2677_v19  ;;  %v1170_v58 = vand.u32 4294901760, %v1169_v45  ;;  %v5420_v45 = vld [vmem:[#allocation53_spill] sm:$0xff]  ;;  %v5421_v19 = vld [vmem:[#allocation54_spill] sm:$0xff] }
 0x1e7   :  { %2680 = vmatprep.subr.bf16.mxu1 %v2679_v3  ;;  %v2689_v38 = vpack.c.bf16 %v5421_v19, %v5420_v45  ;;  %v5422_v3 = vld [vmem:[#allocation56_spill] sm:$0xff]  ;;  %v5433_v45 = vld [vmem:[#allocation63_spill] sm:$0xff] }
 0x1e8   :  { %1171 = vmatprep.mubr.f32.mxu0 %v1170_v58  ;;  %v2691_v26 = vpack.c.bf16 %v5423_v16, %v5422_v3  ;;  %v5425_v58 = vld [vmem:[#allocation30_spill] sm:$0xff]  ;;  %v5435_v3 = vld [vmem:[#allocation65_spill] sm:$0xff] }
 0x1e9   :  { %1177 = vmatmul.mubr.f32.vlgmr.msra.gmra.mrb[2].mxu0 %v1176_v4  ;;  %v2693_v4 = vpack.c.bf16 %v5425_v58, %v5424_v33  ;;  %v5437_v33 = vld [vmem:[#allocation66_spill] sm:$0xff] }
 0x1ea   :  { %2682 = vmatpush1.bf16.msra.mxu1 %v2681_v53  ;;  %v5426_v53 = vld [vmem:[#allocation58_spill] sm:$0xff] }
 0x1eb   :  { %2684 = vmatprep.subr.bf16.mxu1 %v2683_v18  ;;  %v2695_v52 = vpack.c.bf16 %v5427_v1, %v5426_v53  ;;  %v5428_v18 = vld [vmem:[#allocation16_spill] sm:$0xff] }
 0x1ec   :  { %v2697_v34 = vpack.c.bf16 %v5429_v23, %v5428_v18  ;;  %v5439_v53 = vld [vmem:[#allocation68_spill] sm:$0xff]  ;;  %v5441_v18 = vld [vmem:[#allocation69_spill] sm:$0xff] }
 0x1ee   :  { %2686 = vmatpush1.bf16.msra.mxu1 %v2685_v15  ;;  %v5430_v15 = vld [vmem:[#allocation62_spill] sm:$0xff] }
 0x1ef   :  { %2688 = vmatprep.subr.bf16.mxu1 %v2687_v57  ;;  %v2699_v19 = vpack.c.bf16 %v5431_v2, %v5430_v15  ;;  %v5432_v57 = vld [vmem:[#allocation18_spill] sm:$0xff] }
 0x1f0   :  { %v2701_v16 = vpack.c.bf16 %v5433_v45, %v5432_v57  ;;  %v5443_v45 = vld [vmem:[#allocation72_spill] sm:$0xff] }
 0x1f2   :  { %2690 = vmatpush1.bf16.msra.mxu1 %v2689_v38  ;;  %v5434_v38 = vld [vmem:[#allocation20_spill] sm:$0xff] }
 0x1f3   :  { %2692 = vmatprep.subr.bf16.mxu1 %v2691_v26  ;;  %v2703_v58 = vpack.c.bf16 %v5435_v3, %v5434_v38  ;;  %v5436_v26 = vld [vmem:[#allocation22_spill] sm:$0xff] }
 0x1f4   :  { %v2705_v1 = vpack.c.bf16 %v5437_v33, %v5436_v26  ;;  %v5446_v26 = vld [vmem:[#allocation76_spill] sm:$0xff] }
 0x1f6   :  { %2694 = vmatpush1.bf16.msra.mxu1 %v2693_v4  ;;  %v5438_v4 = vld [vmem:[#allocation23_spill] sm:$0xff] }
 0x1f7   :  { %2696 = vmatprep.subr.bf16.mxu1 %v2695_v52  ;;  %v2707_v23 = vpack.c.bf16 %v5439_v53, %v5438_v4  ;;  %v5440_v52 = vld [vmem:[#allocation24_spill] sm:$0xff] }
 0x1f8   :  { %v2709_v2 = vpack.c.bf16 %v5441_v18, %v5440_v52  ;;  %v5449_v52 = vld [vmem:[#allocation82_spill] sm:$0xff] }
 0x1fa   :  { %2698 = vmatpush1.bf16.msra.mxu1 %v2697_v34  ;;  %v2711_v34 = vpack.c.bf16 %v4128_v42, %v4123_v31 }
 0x1fb   :  { %2700 = vmatprep.subr.bf16.mxu1 %v2699_v19  ;;  %v5442_v19 = vld [vmem:[#allocation71_spill] sm:$0xff] }
 0x1fc   :  { %v2713_v3 = vpack.c.bf16 %v5443_v45, %v5442_v19 }
 0x1fe   :  { %2702 = vmatpush1.bf16.msra.mxu1 %v2701_v16  ;;  %v5444_v16 = vld [vmem:[#allocation74_spill] sm:$0xff] }
 0x1ff   :  { %2704 = vmatprep.subr.bf16.mxu1 %v2703_v58  ;;  %v2715_v33 = vpack.c.bf16 %v5444_v16, %v4183_v30  ;;  %v5445_v58 = vld [vmem:[#allocation75_spill] sm:$0xff] }
 0x200   :  { %v2717_v53 = vpack.c.bf16 %v5446_v26, %v5445_v58 }
 0x202   :  { %2706 = vmatpush1.bf16.msra.mxu1 %v2705_v1  ;;  %v5447_v1 = vld [vmem:[#allocation79_spill] sm:$0xff] }
 0x203   :  { %2708 = vmatprep.subr.bf16.mxu1 %v2707_v23  ;;  %v2719_v18 = vpack.c.bf16 %v5447_v1, %v4252_v13  ;;  %v5448_v23 = vld [vmem:[#allocation81_spill] sm:$0xff] }
 0x204   :  { %v2721_v42 = vpack.c.bf16 %v5449_v52, %v5448_v23 }
 0x206   :  { %2710 = vmatpush1.bf16.msra.mxu1 %v2709_v2  ;;  %v2723_v2 = vpack.c.bf16 %v4314_v50, %v4309_v60 }
 0x207   :  { %2712 = vmatprep.subr.bf16.mxu1 %v2711_v34  ;;  %v2725_v34 = vpack.c.bf16 %v4335_v35, %v4330_v7 }
 0x20a   :  { %2714 = vmatpush1.bf16.msra.mxu1 %v2713_v3  ;;  %v2727_v3 = vpack.c.bf16 %v4425_v37, %v4422_v43 }
 0x20b   :  { %2716 = vmatprep.subr.bf16.mxu1 %v2715_v33  ;;  %v2729_v33 = vpack.c.bf16 %v4431_v40, %v4428_v11 }
 0x20e   :  { %2718 = vmatpush1.bf16.msra.mxu1 %v2717_v53  ;;  %v2731_v53 = vpack.c.bf16 %v4445_v28, %v4443_v21 }
 0x20f   :  { %2720 = vmatprep.subr.bf16.mxu1 %v2719_v18  ;;  %v2733_v18 = vpack.c.bf16 %v4455_v61, %v4453_v63 }
 0x212   :  { %2722 = vmatpush1.bf16.msra.mxu1 %v2721_v42  ;;  %v5450_v42 = vand.u32 4294901760, %v4540_v55  ;;  %v5451_v55 = vld [vmem:[#allocation27_spill] sm:$0xff] }
 0x213   :  { %2724 = vmatprep.subr.bf16.mxu1 %v2723_v2  ;;  %v5452_v2 = vld [vmem:[#allocation32_spill] sm:$0xff] }
 0x216   :  { %2726 = vmatpush1.bf16.msra.mxu1 %v2725_v34  ;;  %v5453_v34 = vld [vmem:[#allocation73_spill] sm:$0xff] }
 0x217   :  { %2728 = vmatprep.subr.bf16.mxu1 %v2727_v3  ;;  %v5454_v3 = vld [vmem:[#allocation77_spill] sm:$0xff] }
 0x21a   :  { %2730 = vmatpush1.bf16.msra.mxu1 %v2729_v33  ;;  %v5455_v33 = vld [vmem:[#allocation78_spill] sm:$0xff] }
 0x21b   :  { %2732 = vmatprep.subr.bf16.mxu1 %v2731_v53  ;;  %v5456_v53 = vld [vmem:[#allocation80_spill] sm:$0xff] }
 0x21e   :  { %2734 = vmatpush1.bf16.msra.mxu1 %v2733_v18  ;;  %v5457_v18 = vld [vmem:[#allocation83_spill] sm:$0xff] }
 0x21f   :  { %2736 = vmatprep.subr.bf16.mxu1 %v3598_v5 }
 0x221   :  { %1773 = vmatmul.mubr.f32.vlgmr.msra.gmra.mrb[0].mxu1 %v4535_v56 }
 0x222   :  { %2738 = vmatpush1.bf16.msra.mxu1 %v3624_v62  ;;  %1910 = vmatprep.mubr.f32.mxu1 %v5450_v42  ;;  %v5458_v42 = vld [vmem:[#allocation33_spill] sm:$0xff] }
 0x223   :  { %2740 = vmatprep.subr.bf16.mxu1 %v3656_v59 }
 0x226   :  { %2742 = vmatpush1.bf16.msra.mxu1 %v3710_v39 }
 0x227   :  { %2744 = vmatprep.subr.bf16.mxu1 %v3729_v51 }
 0x22a   :  { %2746 = vmatpush1.bf16.msra.mxu1 %v5370_v6 }
 0x22b   :  { %2748 = vmatprep.subr.bf16.mxu1 %v5371_v20 }
 0x22e   :  { %2750 = vmatpush1.bf16.msra.mxu1 %v5372_v22 }
 0x22f   :  { %2752 = vmatprep.subr.bf16.mxu1 %v5373_v54 }
 0x232   :  { %2754 = vmatpush1.bf16.msra.mxu1 %v5374_v10 }
 0x233   :  { %2756 = vmatprep.subr.bf16.mxu1 %v5375_v12 }
 0x236   :  { %2758 = vmatpush1.bf16.msra.mxu1 %v5376_v24 }
 0x237   :  { %2760 = vmatprep.subr.bf16.mxu1 %v5377_v44 }
 0x23a   :  { %2762 = vmatpush1.bf16.msra.mxu1 %v5378_v29 }
 0x23b   :  { %2764 = vmatprep.subr.bf16.mxu1 %v5379_v32 }
 0x23e   :  { %2766 = vmatpush1.bf16.msra.mxu1 %v5380_v36 }
 0x23f   :  { %2768 = vmatprep.subr.bf16.mxu1 %v5451_v55 }
 0x242   :  { %2770 = vmatpush1.bf16.msra.mxu1 %v5452_v2  ;;  %v5483_v2 = vld [vmem:[#allocation47_spill] sm:$0xff] }
 0x243   :  { %2772 = vmatprep.subr.bf16.mxu1 %v5453_v34 }
 0x246   :  { %2774 = vmatpush1.bf16.msra.mxu1 %v5454_v3 }
 0x247   :  { %2776 = vmatprep.subr.bf16.mxu1 %v5455_v33 }
 0x24a   :  { %2778 = vmatpush1.bf16.msra.mxu1 %v5456_v53  ;;  %v5459_v53 = vand.u32 4294901760, %v5394_v8  ;;  %v5469_v8 = vld [vmem:[#allocation64_spill] sm:$0xff] }
 0x24b   :  { %2780 = vmatprep.subr.bf16.mxu1 %v5457_v18  ;;  %v5460_v18 = vand.u32 4294901760, %v5395_v41  ;;  %v5470_v41 = vld [vmem:[#allocation40_spill] sm:$0xff] }
 0x24d   :  { %v2799_v33 = vpack.c.bf16 %v5460_v18, %v5459_v53  ;;  %v5471_v53 = vand.u32 4294901760, %v5470_v41  ;;  %v5472_v18 = vld [vmem:[#allocation41_spill] sm:$0xff]  ;;  %v5484_v41 = vand.u32 4294901760, %v5483_v2  ;;  %v5497_v2 = vld [vmem:[#allocation56_spill] sm:$0xff] }
 0x24e   :  { %2782 = vmatpush1.bf16.msra.mxu1 %v5458_v42 }
 0x24f   :  { %2784 = vmatprep.subr.bf16.mxu1 %v4471_v27  ;;  %v5461_v27 = vand.u32 4294901760, %v5404_v17 }
 0x252   :  { %2786 = vmatpush1.bf16.msra.mxu1 %v4483_v49  ;;  %v5462_v49 = vld [vmem:[#allocation37_spill] sm:$0xff] }
 0x253   :  { %2788 = vmatprep.subr.bf16.mxu1 %v4491_v14  ;;  %v5463_v42 = vand.u32 4294901760, %v5462_v49  ;;  %v5474_v49 = vld [vmem:[#allocation42_spill] sm:$0xff] }
 0x255   :  { %v2801_v14 = vpack.c.bf16 %v5463_v42, %v5461_v27  ;;  %v5475_v27 = vand.u32 4294901760, %v5474_v49 }
 0x256   :  { %2790 = vmatpush1.bf16.msra.mxu1 %v4497_v48  ;;  %v5464_v48 = vld [vmem:[#allocation38_spill] sm:$0xff] }
 0x257   :  { %2792 = vmatprep.subr.bf16.mxu1 %v4505_v9  ;;  %v5465_v3 = vand.u32 4294901760, %v5464_v48  ;;  %v5466_v9 = vld [vmem:[#allocation39_spill] sm:$0xff] }
 0x258   :  { %v5467_v34 = vand.u32 4294901760, %v5466_v9  ;;  %v5478_v9 = vand.u32 4294901760, %v5412_v47 }
 0x25a   :  { %2794 = vmatpush1.bf16.msra.mxu1 %v4508_v0  ;;  %v2803_v0 = vpack.c.bf16 %v5467_v34, %v5465_v3  ;;  %v5479_v34 = vld [vmem:[#allocation45_spill] sm:$0xff] }
 0x25b   :  { %2796 = vmatprep.subr.bf16.mxu1 %v4511_v25  ;;  %v5468_v25 = vand.u32 4294901760, %v4535_v56  ;;  %v5480_v56 = vand.u32 4294901760, %v5479_v34  ;;  %v5495_v34 = vld [vmem:[#allocation54_spill] sm:$0xff] }
 0x25e   :  { %2798 = vmatpush1.bf16.msra.mxu1 %v4514_v46  ;;  %v5473_v46 = vand.u32 4294901760, %v5472_v18 }
 0x25f   :  { %2800 = vmatprep.subr.bf16.mxu1 %v2799_v33  ;;  %v5476_v33 = vld [vmem:[#allocation43_spill] sm:$0xff] }
 0x260   :  { %v2805_v17 = vpack.c.bf16 %v5473_v46, %v5471_v53  ;;  %v5477_v42 = vand.u32 4294901760, %v5476_v33  ;;  %v5485_v46 = vld [vmem:[#allocation48_spill] sm:$0xff]  ;;  %v5487_v53 = vld [vmem:[#allocation49_spill] sm:$0xff]  ;;  %v5491_v33 = vld [vmem:[#allocation51_spill] sm:$0xff] }
 0x261   :  { %1914 = vmatmul.mubr.f32.vlgmr.msra.gmra.mrb[0].mxu1 %v5468_v25  ;;  %v2809_v25 = vpack.c.bf16 %v5480_v56, %v5478_v9  ;;  %v5488_v18 = vand.u32 4294901760, %v5487_v53  ;;  %v5492_v47 = vand.u32 4294901760, %v5491_v33  ;;  %v5493_v9 = vld [vmem:[#allocation53_spill] sm:$0xff]  ;;  %v5496_v56 = vand.u32 4294901760, %v5495_v34  ;;  %v5503_v53 = vld [vmem:[#allocation30_spill] sm:$0xff]  ;;  %v5507_v33 = vld [vmem:[#allocation15_spill] sm:$0xff] }
 0x262   :  { %2802 = vmatpush1.bf16.msra.mxu1 %v2801_v14  ;;  %2177 = vmatprep.mubr.f32.mxu1 %v5469_v8  ;;  %v2807_v48 = vpack.c.bf16 %v5477_v42, %v5475_v27  ;;  %v5481_v14 = vld [vmem:[#allocation46_spill] sm:$0xff]  ;;  %v5511_v34 = vld [vmem:[#allocation60_spill] sm:$0xff] }
 0x263   :  { %2804 = vmatprep.subr.bf16.mxu1 %v2803_v0  ;;  %v5482_v3 = vand.u32 4294901760, %v5481_v14  ;;  %v5486_v0 = vand.u32 4294901760, %v5485_v46  ;;  %v5489_v27 = vld [vmem:[#allocation50_spill] sm:$0xff] }
 0x265   :  { %v2811_v55 = vpack.c.bf16 %v5484_v41, %v5482_v3  ;;  %v2813_v49 = vpack.c.bf16 %v5488_v18, %v5486_v0  ;;  %v5499_v3 = vld [vmem:[#allocation57_spill] sm:$0xff]  ;;  %v5501_v0 = vld [vmem:[#allocation12_spill] sm:$0xff]  ;;  %v5504_v18 = vand.u32 4294901760, %v5503_v53 }
 0x266   :  { %2806 = vmatpush1.bf16.msra.mxu1 %v2805_v17  ;;  %v5490_v17 = vand.u32 4294901760, %v5489_v27  ;;  %v5500_v41 = vand.u32 4294901760, %v5499_v3 }
 0x267   :  { %2808 = vmatprep.subr.bf16.mxu1 %v2807_v48  ;;  %v5494_v48 = vand.u32 4294901760, %v5493_v9 }
 0x268   :  { %v2815_v42 = vpack.c.bf16 %v5492_v47, %v5490_v17  ;;  %v5505_v17 = vld [vmem:[#allocation58_spill] sm:$0xff]  ;;  %v5508_v47 = vand.u32 4294901760, %v5507_v33 }
 0x269   :  { %v2817_v14 = vpack.c.bf16 %v5496_v56, %v5494_v48  ;;  %v5509_v48 = vld [vmem:[#allocation16_spill] sm:$0xff]  ;;  %v5512_v56 = vand.u32 4294901760, %v5511_v34  ;;  %v5522_v33 = vld [vmem:[#allocation22_spill] sm:$0xff] }
 0x26a   :  { %2810 = vmatpush1.bf16.msra.mxu1 %v2809_v25  ;;  %v5498_v25 = vand.u32 4294901760, %v5497_v2  ;;  %v5527_v34 = vld [vmem:[#allocation68_spill] sm:$0xff] }
 0x26b   :  { %2812 = vmatprep.subr.bf16.mxu1 %v2811_v55  ;;  %v5502_v55 = vand.u32 4294901760, %v5501_v0  ;;  %v5517_v0 = vld [vmem:[#allocation63_spill] sm:$0xff] }
 0x26c   :  { %v2819_v46 = vpack.c.bf16 %v5500_v41, %v5498_v25  ;;  %v5514_v25 = vld [vmem:[#allocation17_spill] sm:$0xff] }
 0x26d   :  { %v2821_v27 = vpack.c.bf16 %v5504_v18, %v5502_v55  ;;  %v5515_v3 = vand.u32 4294901760, %v5514_v25  ;;  %v5518_v55 = vand.u32 4294901760, %v5517_v0  ;;  %v5519_v18 = vand.u32 4294901760, %v5434_v38  ;;  %v5531_v25 = vld [vmem:[#allocation69_spill] sm:$0xff] }
 0x26e   :  { %2814 = vmatpush1.bf16.msra.mxu1 %v2813_v49  ;;  %v5506_v49 = vand.u32 4294901760, %v5505_v17  ;;  %v5532_v38 = vand.u32 4294901760, %v5531_v25 }
 0x26f   :  { %2816 = vmatprep.subr.bf16.mxu1 %v2815_v42  ;;  %v5510_v42 = vand.u32 4294901760, %v5509_v48 }
 0x270   :  { %v2823_v9 = vpack.c.bf16 %v5508_v47, %v5506_v49  ;;  %v5523_v47 = vand.u32 4294901760, %v5522_v33  ;;  %v5540_v33 = vand.u32 4294901760, %v5445_v58  ;;  %v5547_v58 = vand.u32 4294901760, %v4314_v50 }
 0x271   :  { %v2825_v2 = vpack.c.bf16 %v5512_v56, %v5510_v42  ;;  %v5526_v42 = vand.u32 4294901760, %v5438_v4  ;;  %v5537_v4 = vand.u32 4294901760, %v5443_v45  ;;  %v5544_v45 = vand.u32 4294901760, %v5448_v23 }
 0x272   :  { %2818 = vmatpush1.bf16.msra.mxu1 %v2817_v14  ;;  %v5513_v14 = vand.u32 4294901760, %v5430_v15  ;;  %v5551_v23 = vand.u32 4294901760, %v4425_v37  ;;  %v5554_v50 = vand.u32 4294901760, %v4443_v21  ;;  %v5558_v37 = vld [vmem:[#allocation61_spill] sm:$0xff]  ;;  %v5575_v21 = vld [vmem:[#allocation59_spill] sm:$0xff] }
 0x273   :  { %2820 = vmatprep.subr.bf16.mxu1 %v2819_v46  ;;  %v5516_v46 = vand.u32 4294901760, %v5432_v57  ;;  %v5528_v57 = vand.u32 4294901760, %v5527_v34 }
 0x274   :  { %v2827_v41 = vpack.c.bf16 %v5515_v3, %v5513_v14 }
 0x275   :  { %v2829_v53 = vpack.c.bf16 %v5518_v55, %v5516_v46  ;;  %v2835_v56 = vpack.c.bf16 %v5528_v57, %v5526_v42  ;;  %v5534_v46 = vld [vmem:[#allocation31_spill] sm:$0xff] }
 0x276   :  { %2822 = vmatpush1.bf16.msra.mxu1 %v2821_v27  ;;  %v5520_v27 = vld [vmem:[#allocation65_spill] sm:$0xff]  ;;  %v5535_v0 = vand.u32 4294901760, %v5534_v46 }
 0x277   :  { %2824 = vmatprep.subr.bf16.mxu1 %v2823_v9  ;;  %v5521_v17 = vand.u32 4294901760, %v5520_v27  ;;  %v5524_v9 = vld [vmem:[#allocation66_spill] sm:$0xff]  ;;  %v5538_v27 = vand.u32 4294901760, %v4183_v30  ;;  %v5545_v30 = vand.u32 4294901760, %v5449_v52  ;;  %v5552_v52 = vand.u32 4294901760, %v4428_v11 }
 0x278   :  { %v5525_v15 = vand.u32 4294901760, %v5524_v9  ;;  %v5542_v9 = vand.u32 4294901760, %v4252_v13  ;;  %v5549_v13 = vand.u32 4294901760, %v4335_v35  ;;  %v5556_v35 = vand.u32 4294901760, %v4453_v63  ;;  %v5562_v63 = vld [vmem:[#allocation77_spill] sm:$0xff] }
 0x279   :  { %v2831_v49 = vpack.c.bf16 %v5521_v17, %v5519_v18  ;;  %v5539_v17 = vand.u32 4294901760, %v5444_v16  ;;  %v5546_v16 = vand.u32 4294901760, %v4309_v60  ;;  %v5553_v60 = vand.u32 4294901760, %v4431_v40 }
 0x27a   :  { %2826 = vmatpush1.bf16.msra.mxu1 %v2825_v2  ;;  %v2833_v48 = vpack.c.bf16 %v5525_v15, %v5523_v47  ;;  %v5529_v2 = vld [vmem:[#allocation24_spill] sm:$0xff]  ;;  %v5576_v11 = vsub.s32 0, %v5575_v21 }
 0x27b   :  { %2828 = vmatprep.subr.bf16.mxu1 %v2827_v41  ;;  %v5530_v14 = vand.u32 4294901760, %v5529_v2  ;;  %v5533_v41 = vand.u32 4294901760, %v4123_v31  ;;  %v5541_v31 = vand.u32 4294901760, %v5446_v26  ;;  %v2851_v42 = vpack.c.bf16 %v5547_v58, %v5546_v16 }
 0x27c   :  { %v5548_v26 = vand.u32 4294901760, %v4330_v7  ;;  %v5555_v7 = vand.u32 4294901760, %v4445_v28  ;;  %v5564_v28 = vld [vmem:[#allocation80_spill] sm:$0xff] }
 0x27d   :  { %v2837_v3 = vpack.c.bf16 %v5532_v38, %v5530_v14  ;;  %v2839_v55 = vpack.c.bf16 %v5535_v0, %v5533_v41  ;;  %v2845_v47 = vpack.c.bf16 %v5541_v31, %v5540_v33 }
 0x27e   :  { %2830 = vmatpush1.bf16.msra.mxu1 %v2829_v53  ;;  %v5536_v53 = vand.u32 4294901760, %v5442_v19  ;;  %v5543_v19 = vand.u32 4294901760, %v5447_v1  ;;  %v2853_v34 = vpack.c.bf16 %v5549_v13, %v5548_v26  ;;  %v5550_v1 = vand.u32 4294901760, %v4422_v43 }
 0x27f   :  { %2832 = vmatprep.subr.bf16.mxu1 %v2831_v49  ;;  %v2843_v49 = vpack.c.bf16 %v5539_v17, %v5538_v27  ;;  %v2859_v2 = vpack.c.bf16 %v5555_v7, %v5554_v50  ;;  %v5557_v43 = vand.u32 4294901760, %v4455_v61  ;;  %v5563_v61 = vld [vmem:[#allocation78_spill] sm:$0xff] }
 0x280   :  { %v2841_v18 = vpack.c.bf16 %v5537_v4, %v5536_v53  ;;  %v2847_v15 = vpack.c.bf16 %v5543_v19, %v5542_v9  ;;  %v2855_v57 = vpack.c.bf16 %v5551_v23, %v5550_v1 }
 0x281   :  { %v2861_v14 = vpack.c.bf16 %v5557_v43, %v5556_v35 }
 0x282   :  { %2834 = vmatpush1.bf16.msra.mxu1 %v2833_v48  ;;  %v2849_v48 = vpack.c.bf16 %v5545_v30, %v5544_v45 }
 0x283   :  { %2836 = vmatprep.subr.bf16.mxu1 %v2835_v56  ;;  %v2857_v56 = vpack.c.bf16 %v5553_v60, %v5552_v52 }
 0x286   :  { %2838 = vmatpush1.bf16.msra.mxu1 %v2837_v3 }
 0x287   :  { %2840 = vmatprep.subr.bf16.mxu1 %v2839_v55 }
 0x28a   :  { %2842 = vmatpush1.bf16.msra.mxu1 %v2841_v18 }
 0x28b   :  { %2844 = vmatprep.subr.bf16.mxu1 %v2843_v49 }
 0x28e   :  { %2846 = vmatpush1.bf16.msra.mxu1 %v2845_v47 }
 0x28f   :  { %2848 = vmatprep.subr.bf16.mxu1 %v2847_v15 }
 0x292   :  { %2850 = vmatpush1.bf16.msra.mxu1 %v2849_v48 }
 0x293   :  { %2852 = vmatprep.subr.bf16.mxu1 %v2851_v42 }
 0x296   :  { %2854 = vmatpush1.bf16.msra.mxu1 %v2853_v34 }
 0x297   :  { %2856 = vmatprep.subr.bf16.mxu1 %v2855_v57 }
 0x29a   :  { %2858 = vmatpush1.bf16.msra.mxu1 %v2857_v56 }
 0x29b   :  { %2860 = vmatprep.subr.bf16.mxu1 %v2859_v2 }
 0x29e   :  { %2862 = vmatpush1.bf16.msra.mxu1 %v2861_v14 }
 0x29f   :  { %2864 = vmatprep.subr.bf16.mxu1 %v3598_v5 }
 0x2a1   :  { %2179 = vmatmul.mubr.f32.vlgmr.msra.gmra.mrb[0].mxu1 %v5558_v37 }
 0x2a2   :  { %2866 = vmatpush1.bf16.msra.mxu1 %v3624_v62  ;;  %2314 = vmatprep.mubr.f32.mxu1 %v5469_v8  ;;  %v5559_v62 = vld [vmem:[#allocation27_spill] sm:$0xff]  ;;  %v5577_v8 = vsub.s32 1, %v5575_v21 }
 0x2a3   :  { %2868 = vmatprep.subr.bf16.mxu1 %v3656_v59  ;;  %v5560_v59 = vld [vmem:[#allocation32_spill] sm:$0xff] }
 0x2a6   :  { %2870 = vmatpush1.bf16.msra.mxu1 %v3710_v39 }
 0x2a7   :  { %2872 = vmatprep.subr.bf16.mxu1 %v3729_v51  ;;  %v5561_v51 = vld [vmem:[#allocation73_spill] sm:$0xff] }
 0x2aa   :  { %2874 = vmatpush1.bf16.msra.mxu1 %v5370_v6  ;;  %v5565_v6 = vld [vmem:[#allocation83_spill] sm:$0xff] }
 0x2ab   :  { %2876 = vmatprep.subr.bf16.mxu1 %v5371_v20  ;;  %v5566_v20 = vld [vmem:[#allocation33_spill] sm:$0xff] }
 0x2ae   :  { %2878 = vmatpush1.bf16.msra.mxu1 %v5372_v22  ;;  %v5567_v22 = vld [vmem:[#allocation34_spill] sm:$0xff] }
 0x2af   :  { %2880 = vmatprep.subr.bf16.mxu1 %v5373_v54  ;;  %v5568_v54 = vld [vmem:[#allocation35_spill] sm:$0xff] }
 0x2b2   :  { %2882 = vmatpush1.bf16.msra.mxu1 %v5374_v10  ;;  %v5569_v10 = vld [vmem:[#allocation36_spill] sm:$0xff] }
 0x2b3   :  { %2884 = vmatprep.subr.bf16.mxu1 %v5375_v12  ;;  %v5570_v12 = vld [vmem:[#allocation25_spill] sm:$0xff] }
 0x2b6   :  { %2886 = vmatpush1.bf16.msra.mxu1 %v5376_v24  ;;  %v5571_v24 = vld [vmem:[#allocation52_spill] sm:$0xff] }
 0x2b7   :  { %2888 = vmatprep.subr.bf16.mxu1 %v5377_v44  ;;  %v5572_v44 = vld [vmem:[#allocation55_spill] sm:$0xff] }
 0x2ba   :  { %2890 = vmatpush1.bf16.msra.mxu1 %v5378_v29  ;;  %v5573_v29 = vld [vmem:[#allocation13_spill] sm:$0xff] }
 0x2bb   :  { %2892 = vmatprep.subr.bf16.mxu1 %v5379_v32  ;;  %v5574_v32 = vld [vmem:[#allocation14_spill] sm:$0xff] }
 0x2bc   :  { %v1178_v39 = vpop.f32.mrb[2].mxu0 }
 0x2bd   :  { %v1180_v5 = vpop.f32.mrb[3].mxu0 }
 0x2be   :  { %2894 = vmatpush1.bf16.msra.mxu1 %v5380_v36  ;;  %v1026_v36 = vld [vmem:[%s4835_s4] sm:$0x3] }
 0x2bf   :  { %2896 = vmatprep.subr.bf16.mxu1 %v5559_v62  ;;  %v1031_v40 = vrot.slane %v1026_v36, %v5576_v11  ;;  %v1035_v25 = vrot.slane %v1026_v36, %v5577_v8 }
 0x2c1   :  { %v1179_v38 = vadd.f32 %v1178_v39, %v1031_v40  ;;  %v1181_v3 = vadd.f32 %v1180_v5, %v1035_v25 }
 0x2c2   :  { %2898 = vmatpush1.bf16.msra.mxu1 %v5560_v59 }
 0x2c3   :  { %2900 = vmatprep.subr.bf16.mxu1 %v5561_v51 }
 0x2c6   :  { %2902 = vmatpush1.bf16.msra.mxu1 %v5562_v63 }
 0x2c7   :  { %2904 = vmatprep.subr.bf16.mxu1 %v5563_v61 }
 0x2ca   :  { %2906 = vmatpush1.bf16.msra.mxu1 %v5564_v28 }
 0x2cb   :  { %2908 = vmatprep.subr.bf16.mxu1 %v5565_v6 }
 0x2ce   :  { %2910 = vmatpush1.bf16.msra.mxu1 %v5566_v20 }
 0x2cf   :  { %2912 = vmatprep.subr.bf16.mxu1 %v5567_v22 }
 0x2d2   :  { %2914 = vmatpush1.bf16.msra.mxu1 %v5568_v54 }
 0x2d3   :  { %2916 = vmatprep.subr.bf16.mxu1 %v5569_v10 }
 0x2d6   :  { %2918 = vmatpush1.bf16.msra.mxu1 %v5570_v12 }
 0x2d7   :  { %2920 = vmatprep.subr.bf16.mxu1 %v5571_v24 }
 0x2da   :  { %2922 = vmatpush1.bf16.msra.mxu1 %v5572_v44 }
 0x2db   :  { %2924 = vmatprep.subr.bf16.mxu1 %v5573_v29 }
 0x2de   :  { %2926 = vmatpush1.bf16.msra.mxu1 %v5574_v32 }
 0x2e1   :  { %2316 = vmatmul.mubr.f32.vlgmr.msra.gmra.mrb[0].mxu1 %v5558_v37 }
 0x3b4   :  { %v2317_v41 = vpop.f32.mrb[0].mxu1 }
 0x3b5   :  { %v2930_v46 = vadd.f32 %v2317_v41, %v1179_v38  ;;  %v2319_v0 = vpop.f32.mrb[1].mxu1 }
 0x3b6   :  { %v2932_v55 = vadd.f32 %v2319_v0, %v1181_v3 }
 0x3b8   :  { %v2324_v53 = vcombine.low %v2930_v46, %v2932_v55 }
 0x3ba   :  { %2350 = vst.sshfl [vmem:[#allocation8] sm:$0x33 pattern:$0x76325410] %v2324_v53 }
 0x3bb   :  { %3035 = shalt.err (!%p3032_p0)
}
 0x3bc   :  { %s3036_s10 = scalar_lea.hbm %s4836_s5, 64 }
 0x3bd   :  { %p3037_p1 = scmp.ne.s32.totalorder %s4836_s5, %s3036_s10  ;;  %p3040_p2 = scmp.lt.u32.totalorder %s3036_s10, %s4836_s5 }
 0x3bf   :  { %p3042_p3 = pnand %p3040_p2, %p3037_p1 }
 0x3c1   :  { %3045 = shalt.err (!%p3042_p3)
}
 0x3c2   :  { %2343 = dma.vmem_to_hbm [thread:$0]  %s2341_s7, 64, %s4836_s5, [#allocation4]  }
 0x3c3   :  { %3050 = dma.done.wait [#allocation4], 64  }
 0x3c4   :  { %3051 = vsyncadd [#allocation4], 4294967232 }
 0x3c5   :  { %2347 = vsyncpa [#allocation3], 1 }
 0x3c6   :  { %2348 = vsyncpa [#allocation6], 1 }
 0x3c7   :  { %2349 = vsyncpa [#allocation4], 1 }

</bundles_post_ra>
